<compile_context>
chip_gen: v7x
topology: tpu7x:2x2x1
jax: 0.10.0
libtpu: 0.0.40
codegen_flags: <defaults>
</compile_context>

<pallas_src>
import jax
import jax.numpy as jnp
from jax import lax
from jax.experimental import pallas as pl
from jax.experimental.pallas import tpu as pltpu

C = 64   # channels fixed by the module (in/out = 64)
K = 3    # kernel size


def _kw_patches(a, W):
    """a: (R, W, C) bf16 -> (R, W, 3*C) bf16 patch rows.

    kw-major / cin-minor taps with the left/right SAME zero columns inserted
    during the concat (no padded staging slab needed)."""
    z = jnp.zeros((a.shape[0], 1, C), a.dtype)
    left = jnp.concatenate([z, a[:, :W - 1, :]], axis=1)    # x[:, w-1] tap (kw=0)
    right = jnp.concatenate([a[:, 1:, :], z], axis=1)       # x[:, w+1] tap (kw=2)
    return jnp.concatenate([left, a, right], axis=-1)       # (R, W, 3C)


def _res_block_kernel(xm_ref, xt_ref, xb_ref, w1_ref, b1_ref, w2_ref, b2_ref,
                      o_ref):
    # xm_ref : (1, HT, W, C) f32   current row tile of x
    # xt_ref : (1, 2,  W, C) f32   two rows above the tile (clamped at top)
    # xb_ref : (1, 2,  W, C) f32   two rows below the tile (clamped at bottom)
    # w1_ref : (3*C, 3*C)   bf16   conv1 weights, rows = (kw, cin), cols = (kh, cout)
    # b1_ref : (1, C) f32
    # w2_ref : (3*C, 3*C)   bf16
    # b2_ref : (1, C) f32
    # o_ref  : (1, HT, W, C)
    HT = xm_ref.shape[1]
    W = xm_ref.shape[2]
    t = pl.program_id(1)
    nt = pl.num_programs(1)

    # keep-factors: halo rows become SAME zero padding at the image top/bottom
    top_keep = jnp.where(t == 0, 0.0, 1.0).astype(jnp.float32)
    bot_keep = jnp.where(t == nt - 1, 0.0, 1.0).astype(jnp.float32)

    x_tile = xm_ref[0]                                            # (HT, W, C) f32
    slab = jnp.concatenate(
        [xt_ref[0] * top_keep, x_tile, xb_ref[0] * bot_keep],
        axis=0)                                                   # (HT+4, W, C) f32

    # ---- conv1: single MXU matmul, K = kw*C = 192, N = kh*C = 192 ----------
    p1 = _kw_patches(slab.astype(jnp.bfloat16), W)                # (HT+4, W, 3C)
    r1 = jnp.dot(p1.reshape((HT + 4) * W, 3 * C), w1_ref[...],
                 preferred_element_type=jnp.float32)
    r1 = r1.reshape(HT + 4, W, 3 * C)
    # combine the kh taps with row-shifted static-slice adds
    mid = (r1[0:HT + 2, :, 0:C]
           + r1[1:HT + 3, :, C:2 * C]
           + r1[2:HT + 4, :, 2 * C:3 * C]) + b1_ref[...]
    mid = jnp.maximum(mid, 0.0)                                   # (HT+2, W, C) f32

    # rows above/below the image are conv2's zero padding -> mask them
    row = lax.broadcasted_iota(jnp.int32, (HT + 2, 1, 1), 0)
    mask = (jnp.where(row == 0, top_keep, 1.0)
            * jnp.where(row == HT + 1, bot_keep, 1.0))
    mid = mid * mask

    # ---- conv2: single MXU matmul over the mid slab -------------------------
    p2 = _kw_patches(mid.astype(jnp.bfloat16), W)                 # (HT+2, W, 3C)
    r2 = jnp.dot(p2.reshape((HT + 2) * W, 3 * C), w2_ref[...],
                 preferred_element_type=jnp.float32)
    r2 = r2.reshape(HT + 2, W, 3 * C)
    res = (r2[0:HT, :, 0:C]
           + r2[1:HT + 1, :, C:2 * C]
           + r2[2:HT + 2, :, 2 * C:3 * C]) + b2_ref[...]

    # ---- residual add + store ----------------------------------------------
    o_ref[...] = (x_tile + res).reshape(1, HT, W, C).astype(o_ref.dtype)


def _pick_h_tile(H, W, max_tile_elems=2048):
    """Largest even divisor HT of H with HT*W <= max_tile_elems.

    Budget is VMEM-derived (safe on v7x's 64 MiB; raise to ~4096-8192 on
    v5e/v6e); the halo overheads (HT+2)/HT recompute and (HT+4)/HT DMA shrink
    with larger HT."""
    assert H % 2 == 0, "H must be even (2-row halo blocks)"
    divs = [d for d in range(2, H + 1, 2) if H % d == 0]
    fitting = [d for d in divs if d * W <= max_tile_elems]
    return max(fitting) if fitting else min(divs)


@jax.jit
def res_block_nhwc(x_nhwc, w1, b1, w2, b2):
    """x_nhwc: (B, H, W, 64) f32; weights HWIO (3,3,64,64); biases (64,)."""
    B, H, W, Cc = x_nhwc.shape
    assert Cc == C
    HT = _pick_h_tile(H, W)
    nt = H // HT
    hb = HT // 2          # halo block stride (2-row blocks along H)
    nb2 = H // 2          # number of 2-row blocks along H

    # Weight packing: rows = (kw, cin), cols = (kh, cout) -> (3C, 3C) bf16.
    # Matches patch columns (kw-major, cin-minor) and the kh-sliced combine.
    w1p = jnp.transpose(w1, (1, 2, 0, 3)).reshape(K * C, K * C).astype(jnp.bfloat16)
    w2p = jnp.transpose(w2, (1, 2, 0, 3)).reshape(K * C, K * C).astype(jnp.bfloat16)
    b1r = b1.reshape(1, C).astype(jnp.float32)
    b2r = b2.reshape(1, C).astype(jnp.float32)

    flops = 2 * 2 * B * H * W * K * K * C * C          # two 3x3 convs (MACs*2)
    bytes_accessed = (2 * B * H * W * C * 4            # x in + y out (f32)
                      + 2 * (K * C) * (K * C) * 2      # bf16 packed weights
                      + 2 * C * 4)                     # biases

    grid_spec = pltpu.PrefetchScalarGridSpec(
        num_scalar_prefetch=0,
        grid=(B, nt),
        in_specs=[
            pl.BlockSpec((1, HT, W, C), lambda b, t: (b, t, 0, 0)),       # tile
            pl.BlockSpec((1, 2, W, C),                                    # top halo rows
                         lambda b, t: (b, jnp.maximum(t * hb - 1, 0), 0, 0)),
            pl.BlockSpec((1, 2, W, C),                                    # bottom halo rows
                         lambda b, t: (b, jnp.minimum((t + 1) * hb, nb2 - 1), 0, 0)),
            pl.BlockSpec((K * C, K * C), lambda b, t: (0, 0)),            # w1 packed
            pl.BlockSpec((1, C), lambda b, t: (0, 0)),                    # b1
            pl.BlockSpec((K * C, K * C), lambda b, t: (0, 0)),            # w2 packed
            pl.BlockSpec((1, C), lambda b, t: (0, 0)),                    # b2
        ],
        out_specs=pl.BlockSpec((1, HT, W, C), lambda b, t: (b, t, 0, 0)),
    )

    return pl.pallas_call(
        _res_block_kernel,
        out_shape=jax.ShapeDtypeStruct((B, H, W, C), x_nhwc.dtype),
        grid_spec=grid_spec,
        compiler_params=pltpu.CompilerParams(
            dimension_semantics=("parallel", "parallel"),
            vmem_limit_bytes=32 * 1024 * 1024),
        cost_estimate=pl.CostEstimate(flops=flops, transcendentals=0,
                                      bytes_accessed=bytes_accessed),
    )(x_nhwc, x_nhwc, x_nhwc, w1p, b1r, w2p, b2r)


def res_block_nchw(x_nchw, w1, b1, w2, b2):
    """PyTorch-style NCHW entry point.

    NOTE: if the surrounding model can stay NHWC across multiple Res_Blocks,
    call res_block_nhwc directly and pay the transpose cost once, not per block.
    """
    x_nhwc = jnp.transpose(x_nchw, (0, 2, 3, 1))
    y_nhwc = res_block_nhwc(x_nhwc, w1, b1, w2, b2)
    return jnp.transpose(y_nhwc, (0, 3, 1, 2))


def _reference_nhwc(x_nhwc, w1, b1, w2, b2):
    """Pure-JAX f32 reference (lax.conv) for correctness checking."""
    dn = ("NHWC", "HWIO", "NHWC")
    r = lax.conv_general_dilated(x_nhwc, w1, (1, 1), "SAME",
                                 dimension_numbers=dn,
                                 precision=lax.Precision.HIGHEST) + b1
    r = jnp.maximum(r, 0.0)
    r = lax.conv_general_dilated(r, w2, (1, 1), "SAME",
                                 dimension_numbers=dn,
                                 precision=lax.Precision.HIGHEST) + b2
    return x_nhwc + r


if __name__ == "__main__":
    key = jax.random.PRNGKey(0)
    k_x, k_w1, k_b1, k_w2, k_b2 = jax.random.split(key, 5)

    B, H, W = 2, 16, 16
    # Deterministic parameter init (kaiming-like scale, fan_in = C*K*K).
    fan_in = C * K * K
    scale = 1.0 / jnp.sqrt(fan_in)
    w1 = jax.random.normal(k_w1, (K, K, C, C), jnp.float32) * scale
    b1 = jax.random.normal(k_b1, (C,), jnp.float32) * scale
    w2 = jax.random.normal(k_w2, (K, K, C, C), jnp.float32) * scale
    b2 = jax.random.normal(k_b2, (C,), jnp.float32) * scale

    # Input in PyTorch NCHW convention.
    x_nchw = jax.random.normal(k_x, (B, C, H, W), jnp.float32)

    y = res_block_nchw(x_nchw, w1, b1, w2, b2)
    y = jax.block_until_ready(y)

    # Sanity check against pure-JAX f32 reference (kernel uses bf16 MXU inputs
    # with f32 accumulation, so allow a small tolerance).
    x_nhwc = jnp.transpose(x_nchw, (0, 2, 3, 1))
    y_ref = jnp.transpose(_reference_nhwc(x_nhwc, w1, b1, w2, b2), (0, 3, 1, 2))
    assert y.shape == x_nchw.shape
    err = jnp.max(jnp.abs(y - y_ref))
    assert jnp.allclose(y, y_ref, atol=2e-2, rtol=2e-2), f"max err {err}"

    print("KERNEL_OK")
</pallas_src>

<mosaic_0001>
module attributes {stable_mosaic.version = 11 : i64} {
  func.func @_res_block_kernel(%arg0: i32, %arg1: i32, %arg2: memref<1x16x16x64xf32, #tpu.memory_space<vmem>>, %arg3: memref<1x2x16x64xf32, #tpu.memory_space<vmem>>, %arg4: memref<1x2x16x64xf32, #tpu.memory_space<vmem>>, %arg5: memref<192x192xbf16, #tpu.memory_space<vmem>>, %arg6: memref<1x64xf32, #tpu.memory_space<vmem>>, %arg7: memref<192x192xbf16, #tpu.memory_space<vmem>>, %arg8: memref<1x64xf32, #tpu.memory_space<vmem>>, %arg9: memref<1x16x16x64xf32, #tpu.memory_space<vmem>>) attributes {dimension_semantics = [#tpu.dimension_semantics<parallel>, #tpu.dimension_semantics<parallel>], iteration_bounds = array<i64: 2, 1>, scalar_prefetch = 0 : i64, scratch_operands = 0 : i64, tpu.core_type = #tpu.core_type<tc>, window_params = [{transform_indices = @transform_0, window_bounds = array<i64: 1, 16, 16, 64>}, {transform_indices = @transform_1, window_bounds = array<i64: 1, 2, 16, 64>}, {transform_indices = @transform_2, window_bounds = array<i64: 1, 2, 16, 64>}, {pipeline_mode = #tpu.pipeline_mode<synchronous>, transform_indices = @transform_3, window_bounds = array<i64: 192, 192>}, {pipeline_mode = #tpu.pipeline_mode<synchronous>, transform_indices = @transform_4, window_bounds = array<i64: 1, 64>}, {pipeline_mode = #tpu.pipeline_mode<synchronous>, transform_indices = @transform_5, window_bounds = array<i64: 192, 192>}, {pipeline_mode = #tpu.pipeline_mode<synchronous>, transform_indices = @transform_6, window_bounds = array<i64: 1, 64>}, {transform_indices = @transform_7, window_bounds = array<i64: 1, 16, 16, 64>}]} {
    %c0_i32 = arith.constant 0 : i32
    %0 = arith.cmpi eq, %arg1, %c0_i32 : i32
    %cst = arith.constant 0.000000e+00 : f32
    %cst_0 = arith.constant 1.000000e+00 : f32
    %1 = arith.select %0, %cst, %cst_0 : f32
    %c0_i32_1 = arith.constant 0 : i32
    %2 = arith.cmpi eq, %arg1, %c0_i32_1 : i32
    %cst_2 = arith.constant 0.000000e+00 : f32
    %cst_3 = arith.constant 1.000000e+00 : f32
    %3 = arith.select %2, %cst_2, %cst_3 : f32
    %c0 = arith.constant 0 : index
    %c0_4 = arith.constant 0 : index
    %c0_5 = arith.constant 0 : index
    %c0_6 = arith.constant 0 : index
    %4 = vector.load %arg2[%c0, %c0_4, %c0_5, %c0_6] : memref<1x16x16x64xf32, #tpu.memory_space<vmem>>, vector<1x16x16x64xf32>
    %5 = vector.shape_cast %4 : vector<1x16x16x64xf32> to vector<16x16x64xf32>
    %c0_7 = arith.constant 0 : index
    %c0_8 = arith.constant 0 : index
    %c0_9 = arith.constant 0 : index
    %c0_10 = arith.constant 0 : index
    %6 = vector.load %arg3[%c0_7, %c0_8, %c0_9, %c0_10] : memref<1x2x16x64xf32, #tpu.memory_space<vmem>>, vector<1x2x16x64xf32>
    %7 = vector.shape_cast %6 : vector<1x2x16x64xf32> to vector<2x16x64xf32>
    %8 = vector.broadcast %1 : f32 to vector<2x16x64xf32>
    %9 = arith.mulf %7, %8 : vector<2x16x64xf32>
    %c0_11 = arith.constant 0 : index
    %c0_12 = arith.constant 0 : index
    %c0_13 = arith.constant 0 : index
    %c0_14 = arith.constant 0 : index
    %10 = vector.load %arg4[%c0_11, %c0_12, %c0_13, %c0_14] : memref<1x2x16x64xf32, #tpu.memory_space<vmem>>, vector<1x2x16x64xf32>
    %11 = vector.shape_cast %10 : vector<1x2x16x64xf32> to vector<2x16x64xf32>
    %12 = vector.broadcast %3 : f32 to vector<2x16x64xf32>
    %13 = arith.mulf %11, %12 : vector<2x16x64xf32>
    %14 = tpu.concatenate %9, %5, %13 in 0 : vector<2x16x64xf32>, vector<16x16x64xf32>, vector<2x16x64xf32> -> vector<20x16x64xf32>
    %15 = arith.truncf %14 : vector<20x16x64xf32> to vector<20x16x64xbf16>
    %cst_15 = arith.constant 0.000000e+00 : bf16
    %16 = vector.broadcast %cst_15 : bf16 to vector<20x1x64xbf16>
    %17 = vector.extract_strided_slice %15 {offsets = [0, 0, 0], sizes = [20, 15, 64], strides = [1, 1, 1]} : vector<20x16x64xbf16> to vector<20x15x64xbf16>
    %18 = tpu.concatenate %16, %17 in 1 : vector<20x1x64xbf16>, vector<20x15x64xbf16> -> vector<20x16x64xbf16>
    %19 = vector.extract_strided_slice %15 {offsets = [0, 1, 0], sizes = [20, 15, 64], strides = [1, 1, 1]} : vector<20x16x64xbf16> to vector<20x15x64xbf16>
    %20 = tpu.concatenate %19, %16 in 1 : vector<20x15x64xbf16>, vector<20x1x64xbf16> -> vector<20x16x64xbf16>
    %21 = tpu.concatenate %18, %15, %20 in 2 : vector<20x16x64xbf16>, vector<20x16x64xbf16>, vector<20x16x64xbf16> -> vector<20x16x192xbf16>
    %22 = vector.shape_cast %21 : vector<20x16x192xbf16> to vector<320x192xbf16>
    %c0_16 = arith.constant 0 : index
    %c0_17 = arith.constant 0 : index
    %23 = vector.load %arg5[%c0_16, %c0_17] : memref<192x192xbf16, #tpu.memory_space<vmem>>, vector<192x192xbf16>
    %cst_18 = arith.constant dense<0.000000e+00> : vector<320x192xf32>
    %24 = tpu.matmul %22, %23, %cst_18 {dimension_numbers = #tpu.dot_dimension_numbers<[1], [0], [0], [1], [0, 0, 1, 1], [], []>} : vector<320x192xbf16>, vector<192x192xbf16>, vector<320x192xf32> -> vector<320x192xf32>
    %25 = vector.shape_cast %24 : vector<320x192xf32> to vector<20x16x192xf32>
    %26 = vector.extract_strided_slice %25 {offsets = [0, 0, 0], sizes = [18, 16, 64], strides = [1, 1, 1]} : vector<20x16x192xf32> to vector<18x16x64xf32>
    %27 = vector.extract_strided_slice %25 {offsets = [1, 0, 64], sizes = [18, 16, 64], strides = [1, 1, 1]} : vector<20x16x192xf32> to vector<18x16x64xf32>
    %28 = arith.addf %26, %27 : vector<18x16x64xf32>
    %29 = vector.extract_strided_slice %25 {offsets = [2, 0, 128], sizes = [18, 16, 64], strides = [1, 1, 1]} : vector<20x16x192xf32> to vector<18x16x64xf32>
    %30 = arith.addf %28, %29 : vector<18x16x64xf32>
    %c0_19 = arith.constant 0 : index
    %c0_20 = arith.constant 0 : index
    %31 = vector.load %arg6[%c0_19, %c0_20] : memref<1x64xf32, #tpu.memory_space<vmem>>, vector<1x64xf32>
    %32 = vector.shape_cast %31 : vector<1x64xf32> to vector<1x1x64xf32>
    %33 = vector.broadcast %32 : vector<1x1x64xf32> to vector<18x16x64xf32>
    %34 = arith.addf %30, %33 : vector<18x16x64xf32>
    %cst_21 = arith.constant 0.000000e+00 : f32
    %35 = vector.broadcast %cst_21 : f32 to vector<18x16x64xf32>
    %36 = arith.maximumf %34, %35 : vector<18x16x64xf32>
    %37 = tpu.iota {dimensions = array<i32: 0>} : vector<18x1x1xi32>
    %c0_i32_22 = arith.constant 0 : i32
    %38 = vector.broadcast %c0_i32_22 : i32 to vector<18x1x1xi32>
    %39 = arith.cmpi eq, %37, %38 : vector<18x1x1xi32>
    %cst_23 = arith.constant 1.000000e+00 : f32
    %40 = vector.broadcast %1 : f32 to vector<18x1x1xf32>
    %41 = vector.broadcast %cst_23 : f32 to vector<18x1x1xf32>
    %42 = arith.select %39, %40, %41 : vector<18x1x1xi1>, vector<18x1x1xf32>
    %c17_i32 = arith.constant 17 : i32
    %43 = vector.broadcast %c17_i32 : i32 to vector<18x1x1xi32>
    %44 = arith.cmpi eq, %37, %43 : vector<18x1x1xi32>
    %cst_24 = arith.constant 1.000000e+00 : f32
    %45 = vector.broadcast %3 : f32 to vector<18x1x1xf32>
    %46 = vector.broadcast %cst_24 : f32 to vector<18x1x1xf32>
    %47 = arith.select %44, %45, %46 : vector<18x1x1xi1>, vector<18x1x1xf32>
    %48 = arith.mulf %42, %47 : vector<18x1x1xf32>
    %49 = vector.broadcast %48 : vector<18x1x1xf32> to vector<18x16x64xf32>
    %50 = arith.mulf %36, %49 : vector<18x16x64xf32>
    %51 = arith.truncf %50 : vector<18x16x64xf32> to vector<18x16x64xbf16>
    %cst_25 = arith.constant 0.000000e+00 : bf16
    %52 = vector.broadcast %cst_25 : bf16 to vector<18x1x64xbf16>
    %53 = vector.extract_strided_slice %51 {offsets = [0, 0, 0], sizes = [18, 15, 64], strides = [1, 1, 1]} : vector<18x16x64xbf16> to vector<18x15x64xbf16>
    %54 = tpu.concatenate %52, %53 in 1 : vector<18x1x64xbf16>, vector<18x15x64xbf16> -> vector<18x16x64xbf16>
    %55 = vector.extract_strided_slice %51 {offsets = [0, 1, 0], sizes = [18, 15, 64], strides = [1, 1, 1]} : vector<18x16x64xbf16> to vector<18x15x64xbf16>
    %56 = tpu.concatenate %55, %52 in 1 : vector<18x15x64xbf16>, vector<18x1x64xbf16> -> vector<18x16x64xbf16>
    %57 = tpu.concatenate %54, %51, %56 in 2 : vector<18x16x64xbf16>, vector<18x16x64xbf16>, vector<18x16x64xbf16> -> vector<18x16x192xbf16>
    %58 = vector.shape_cast %57 : vector<18x16x192xbf16> to vector<288x192xbf16>
    %c0_26 = arith.constant 0 : index
    %c0_27 = arith.constant 0 : index
    %59 = vector.load %arg7[%c0_26, %c0_27] : memref<192x192xbf16, #tpu.memory_space<vmem>>, vector<192x192xbf16>
    %cst_28 = arith.constant dense<0.000000e+00> : vector<288x192xf32>
    %60 = tpu.matmul %58, %59, %cst_28 {dimension_numbers = #tpu.dot_dimension_numbers<[1], [0], [0], [1], [0, 0, 1, 1], [], []>} : vector<288x192xbf16>, vector<192x192xbf16>, vector<288x192xf32> -> vector<288x192xf32>
    %61 = vector.shape_cast %60 : vector<288x192xf32> to vector<18x16x192xf32>
    %62 = vector.extract_strided_slice %61 {offsets = [0, 0, 0], sizes = [16, 16, 64], strides = [1, 1, 1]} : vector<18x16x192xf32> to vector<16x16x64xf32>
    %63 = vector.extract_strided_slice %61 {offsets = [1, 0, 64], sizes = [16, 16, 64], strides = [1, 1, 1]} : vector<18x16x192xf32> to vector<16x16x64xf32>
    %64 = arith.addf %62, %63 : vector<16x16x64xf32>
    %65 = vector.extract_strided_slice %61 {offsets = [2, 0, 128], sizes = [16, 16, 64], strides = [1, 1, 1]} : vector<18x16x192xf32> to vector<16x16x64xf32>
    %66 = arith.addf %64, %65 : vector<16x16x64xf32>
    %c0_29 = arith.constant 0 : index
    %c0_30 = arith.constant 0 : index
    %67 = vector.load %arg8[%c0_29, %c0_30] : memref<1x64xf32, #tpu.memory_space<vmem>>, vector<1x64xf32>
    %68 = vector.shape_cast %67 : vector<1x64xf32> to vector<1x1x64xf32>
    %69 = vector.broadcast %68 : vector<1x1x64xf32> to vector<16x16x64xf32>
    %70 = arith.addf %66, %69 : vector<16x16x64xf32>
    %71 = arith.addf %5, %70 : vector<16x16x64xf32>
    %72 = vector.shape_cast %71 : vector<16x16x64xf32> to vector<1x16x16x64xf32>
    %c0_31 = arith.constant 0 : index
    %c0_32 = arith.constant 0 : index
    %c0_33 = arith.constant 0 : index
    %c0_34 = arith.constant 0 : index
    %73 = vector.load %arg9[%c0_31, %c0_32, %c0_33, %c0_34] : memref<1x16x16x64xf32, #tpu.memory_space<vmem>>, vector<1x16x16x64xf32>
    tpu.vector_store %arg9[%c0_31, %c0_32, %c0_33, %c0_34], %72 {strides = array<i32>} : memref<1x16x16x64xf32, #tpu.memory_space<vmem>>, vector<1x16x16x64xf32>,
    return
  }
  func.func @transform_0(%arg0: i32, %arg1: i32) -> (i32, i32, i32, i32) {
    %c0_i32 = arith.constant 0 : i32
    %c0_i32_0 = arith.constant 0 : i32
    %c0_i32_1 = arith.constant 0 : i32
    return %arg0, %arg1, %c0_i32, %c0_i32_0 : i32, i32, i32, i32
  }
  func.func @transform_1(%arg0: i32, %arg1: i32) -> (i32, i32, i32, i32) {
    %c8_i32 = arith.constant 8 : i32
    %0 = arith.muli %arg1, %c8_i32 : i32
    %c1_i32 = arith.constant 1 : i32
    %1 = arith.subi %0, %c1_i32 : i32
    %c0_i32 = arith.constant 0 : i32
    %2 = arith.maxsi %1, %c0_i32 : i32
    %c0_i32_0 = arith.constant 0 : i32
    %c0_i32_1 = arith.constant 0 : i32
    %c0_i32_2 = arith.constant 0 : i32
    return %arg0, %2, %c0_i32_0, %c0_i32_1 : i32, i32, i32, i32
  }
  func.func @transform_2(%arg0: i32, %arg1: i32) -> (i32, i32, i32, i32) {
    %c1_i32 = arith.constant 1 : i32
    %0 = arith.addi %arg1, %c1_i32 : i32
    %c8_i32 = arith.constant 8 : i32
    %1 = arith.muli %0, %c8_i32 : i32
    %c7_i32 = arith.constant 7 : i32
    %2 = arith.minsi %1, %c7_i32 : i32
    %c0_i32 = arith.constant 0 : i32
    %c0_i32_0 = arith.constant 0 : i32
    %c0_i32_1 = arith.constant 0 : i32
    return %arg0, %2, %c0_i32, %c0_i32_0 : i32, i32, i32, i32
  }
  func.func @transform_3(%arg0: i32, %arg1: i32) -> (i32, i32) {
    %c0_i32 = arith.constant 0 : i32
    %c0_i32_0 = arith.constant 0 : i32
    %c0_i32_1 = arith.constant 0 : i32
    return %c0_i32, %c0_i32_0 : i32, i32
  }
  func.func @transform_4(%arg0: i32, %arg1: i32) -> (i32, i32) {
    %c0_i32 = arith.constant 0 : i32
    %c0_i32_0 = arith.constant 0 : i32
    %c0_i32_1 = arith.constant 0 : i32
    return %c0_i32, %c0_i32_0 : i32, i32
  }
  func.func @transform_5(%arg0: i32, %arg1: i32) -> (i32, i32) {
    %c0_i32 = arith.constant 0 : i32
    %c0_i32_0 = arith.constant 0 : i32
    %c0_i32_1 = arith.constant 0 : i32
    return %c0_i32, %c0_i32_0 : i32, i32
  }
  func.func @transform_6(%arg0: i32, %arg1: i32) -> (i32, i32) {
    %c0_i32 = arith.constant 0 : i32
    %c0_i32_0 = arith.constant 0 : i32
    %c0_i32_1 = arith.constant 0 : i32
    return %c0_i32, %c0_i32_0 : i32, i32
  }
  func.func @transform_7(%arg0: i32, %arg1: i32) -> (i32, i32, i32, i32) {
    %c0_i32 = arith.constant 0 : i32
    %c0_i32_0 = arith.constant 0 : i32
    %c0_i32_1 = arith.constant 0 : i32
    return %arg0, %arg1, %c0_i32, %c0_i32_0 : i32, i32, i32, i32
  }
}

</mosaic_0001>

<bundles_post_ra>
// kernel: res_block_nhwc.1
= control target key start
LH: loop header
LB: loop body
LE: loop exit
PB: predicated region body
PF: predicated region fallthrough
CT: control target
= control target key end

     0   :  { %12 = vsyncpa [#allocation3], 0  ;;  %s4756_s0 = inlined_call_operand.vmem [shape: f32[2,16,16,64], index: 0, kind: input, shape index: {}, may-alias: {0,1,2}]   ;;  %s4757_s1 = inlined_call_operand.vmem [shape: f32[2,16,16,64], index: 1, kind: input, shape index: {}, may-alias: {0,1,2}]   ;;  %s4758_s2 = inlined_call_operand.vmem [shape: f32[2,16,16,64], index: 2, kind: input, shape index: {}, may-alias: {0,1,2}]   ;;  %s4759_s3 = inlined_call_operand.vmem [shape: bf16[192,192], index: 3, kind: input, shape index: {}]   ;;  %s4760_s4 = inlined_call_operand.vmem [shape: f32[1,64], index: 4, kind: input, shape index: {}]   ;;  %s4761_s5 = inlined_call_operand.vmem [shape: bf16[192,192], index: 5, kind: input, shape index: {}]   ;;  %s4762_s6 = inlined_call_operand.vmem [shape: f32[1,64], index: 6, kind: input, shape index: {}]   ;;  %s4763_s7 = inlined_call_operand.hbm [shape: f32[2,16,16,64], index: 7, kind: output, shape index: {}]  }
   0x1   :  { %14 = vsyncpa [#allocation3 + $0x1], 0  ;;  %s3270_s24 = smov 0   ;;  %s3272_s25 = smov 0  }
   0x2   :  { %s3274_s26 = smov 0   ;;  %s3276_s27 = smov 0  }
   0x3   :  { %s3278_s28 = smov 0   ;;  %s3280_s29 = smov 0  }
   0x4 LB: > { %s2873_s30 = sadd.s32 4294967295, %s3224_s29   ;;  %s2874_s8 = sadd.s32 4294967294, %s3224_s29   ;;  %s3224_s29 = sphi %s3280_s29, %s20_s29   ;;  %s3220_s28 = sphi %s3278_s28, %s4808_s28   ;;  %s3216_s27 = sphi %s3276_s27, %s4807_s27   ;;  %s3212_s26 = sphi %s3274_s26, %s4806_s26   ;;  %s3208_s25 = sphi %s3272_s25, %s4805_s25   ;;  %s3204_s24 = sphi %s3270_s24, %s4804_s24  }
   0x5   : > { %s32_s9 = sadd.s32 1, %s3220_s28  ;;  %s225_s10 = sadd.s32 1, %s3212_s26 }
   0x6   : > { %p34_p0 = scmp.ge.s32.totalorder %s32_s9, 2  ;;  %p235_p1 = scmp.ne.s32.totalorder %s3212_s26, %s3208_s25 }
   0x7   : > { %p236_p2 = scmp.eq.s32.totalorder %s2873_s30, 1  ;;  %p241_p3 = scmp.ne.s32.totalorder %s3208_s25, %s3204_s24 }
   0x8   : > { %s4810_s9 = smov (%p34_p0, %s32_s9), 0  ;;  %p242_p5 = scmp.eq.s32.totalorder %s2874_s8, 1 }
   0x9   : > { %p3310_p4 = por %p236_p2, %p235_p1  ;;  %s220_s12 = ssub.s32 %s3220_s28, %s4810_s9 }
   0xa   : > { %p2877_p6 = scmp.ge.s32.totalorder %s3224_s29, 1  ;;  %p223_p7 = scmp.eq.s32.totalorder %s220_s12, 0 }
   0xb   : > { %p3317_p8 = por %p242_p5, %p241_p3  ;;  %p330_p9 = scmp.lt.s32.totalorder %s3224_s29, 3 }
   0xc   : > { %s3323_s14 = scalar_select %p223_p7, %s3212_s26, %s225_s10  }
   0xd   : > { %p331_p10 = pnand %p2877_p6, %p330_p9 }
   0xf   : > { %334 = sbr.rel (%p331_p10) target bundleno = 1151 (0x47f), region = 48 }
  0x16   : > { %p396_p11 = scmp.lt.s32.totalorder %s3216_s27, 1  ;;  %v3042_v0 = vld [vmem:[%s4759_s3 + $0x4] ss:$8 sps:$4 sm:$0xff]   ;;  %v3044_v1 = vld [vmem:[%s4759_s3] ss:$8 sps:$4 sm:$0xff]   ;;  %s3226_s8 = smov 64  }
  0x17   : > { %1128 = vmatprep.subr.bf16.mxu0 %v3042_v0  ;;  %v3045_v2 = vld [vmem:[%s4759_s3 + $0x14] ss:$8 sps:$4 sm:$0xff]   ;;  %v3047_v3 = vld [vmem:[%s4759_s3 + $0x10] ss:$8 sps:$4 sm:$0xff]   ;;  %v3048_v4 = vld [vmem:[%s4759_s3 + $0x24] ss:$8 sps:$4 sm:$0xff]  }
  0x18   : > { %s397_s19 = scalar_select %p396_p11, %s3216_s27, 1  ;;  %1129 = vmatpush1.bf16.msra.mxu0 %v3044_v1  ;;  %v3050_v5 = vld [vmem:[%s4759_s3 + $0x20] ss:$8 sps:$4 sm:$0xff]   ;;  %v3051_v19 = vld [vmem:[%s4759_s3 + $0x34] ss:$8 sps:$4 sm:$0xff]   ;;  %vm760_vm0 = vcmask 1047552  }
  0x19   : > { %1130 = vmatprep.subr.bf16.mxu0 %v3045_v2  ;;  %v3053_v25 = vld [vmem:[%s4759_s3 + $0x30] ss:$8 sps:$4 sm:$0xff]   ;;  %v3054_v30 = vld [vmem:[%s4759_s3 + $0x44] ss:$8 sps:$4 sm:$0xff]   ;;  %v3056_v37 = vld [vmem:[%s4759_s3 + $0x40] ss:$8 sps:$4 sm:$0xff]  }
  0x1a   : > { %s3339_s30 = sshll.u32 %s397_s19, 8  ;;  %v3057_v39 = vld [vmem:[%s4759_s3 + $0x54] ss:$8 sps:$4 sm:$0xff]   ;;  %v3059_v47 = vld [vmem:[%s4759_s3 + $0x50] ss:$8 sps:$4 sm:$0xff]   ;;  %vm843_vm2 = vcmask 523264  }
  0x1b   : > { %s419_s16 = scalar_lea.vmem %s4757_s1, %s3339_s30  ;;  %s3352_s20 = scalar_lea.vmem %s4756_s0, %s3339_s30  ;;  %v3060_v49 = vld [vmem:[%s4759_s3 + $0x64] ss:$8 sps:$4 sm:$0xff]   ;;  %vm761_vm1 = vsmask.f32 7424  ;;  %v3062_v55 = vld [vmem:[%s4759_s3 + $0x60] ss:$8 sps:$4 sm:$0xff]  }
  0x1c   : > { %v480_v6 = vld [vmem:[%s419_s16] sm:$0xff]  ;;  %v481_v7 = vld [vmem:[%s419_s16 + $0x8] sm:$0xff]  ;;  %v482_v8 = vld [vmem:[%s419_s16 + $0x10] sm:$0xff]  ;;  %1131 = vmatpush1.bf16.msra.mxu0 %v3047_v3  ;;  %vm677_vm4 = vcmask 1040384   ;;  %vm678_vm5 = vsmask.f32 256 }
  0x1d   : > { %v485_v9 = vmul.f32 0.0, %v480_v6  ;;  %v486_v10 = vmul.f32 0.0, %v481_v7  ;;  %v483_v11 = vld [vmem:[%s419_s16 + $0x18] sm:$0xff]  ;;  %v487_v12 = vmul.f32 0.0, %v482_v8  ;;  %v448_v13 = vld [vmem:[%s3352_s20] sm:$0xff]  ;;  %v449_v14 = vld [vmem:[%s3352_s20 + $0x8] sm:$0xff]  ;;  %1132 = vmatprep.subr.bf16.mxu0 %v3048_v4 }
  0x1e   : > { %v488_v15 = vmul.f32 0.0, %v483_v11  ;;  %v3359_v16 = vpack.c.bf16 %v449_v14, %v448_v13  ;;  %v450_v17 = vld [vmem:[%s3352_s20 + $0x10] sm:$0xff]  ;;  %v451_v18 = vld [vmem:[%s3352_s20 + $0x18] sm:$0xff]  ;;  %v452_v27 = vld [vmem:[%s3352_s20 + $0x20] sm:$0xff]  ;;  %s2981_s17 = sadd.s32 224, %s3339_s30  ;;  %s392_s16 = sand.u32 1, %s3208_s25  }
  0x1f   : > { %v497_v20 = vpack.c.bf16 %v486_v10, %v485_v9  ;;  %v3368_v21 = vpack.c.bf16 %v451_v18, %v450_v17  ;;  %v454_v23 = vld [vmem:[%s3352_s20 + $0x30] sm:$0xff]  ;;  %v455_v24 = vld [vmem:[%s3352_s20 + $0x38] sm:$0xff]  ;;  %v453_v28 = vld [vmem:[%s3352_s20 + $0x28] sm:$0xff]  ;;  %s3541_s22 = scalar_lea.vmem %s4758_s2, %s2981_s17  ;;  %s2878_s21 = sshll.u32 %s392_s16, 8 }
  0x20   : > { %807 = vrot.lane.b32.xlu1 %v3359_v16, %s3226_s8  ;;  %v3371_v22 = vpack.c.bf16 %v488_v15, %v487_v12  ;;  %1133 = vmatpush1.bf16.msra.mxu0 %v3050_v5  ;;  %v458_v29 = vld [vmem:[%s3352_s20 + $0x50] sm:$0xff]  ;;  %v3386_v32 = vpack.c.bf16 %v455_v24, %v454_v23  ;;  %v456_v33 = vld [vmem:[%s3352_s20 + $0x40] sm:$0xff]  ;;  %v459_v34 = vld [vmem:[%s3352_s20 + $0x58] sm:$0xff]  ;;  %v3392_v36 = vpack.c.bf16 %v453_v28, %v452_v27  ;;  %s3227_s15 = smov [#allocation2]  }
  0x21   : > { %803 = vrot.lane.b32.xlu0 %v497_v20, %s3226_s8  ;;  %v518_v26 = vshrl.u32 %v497_v20, 16  ;;  %1134 = vmatprep.subr.bf16.mxu0 %v3051_v19  ;;  %v521_v31 = vshll.u32 %v497_v20, 16  ;;  %v457_v38 = vld [vmem:[%s3352_s20 + $0x48] sm:$0xff]  ;;  %v462_v41 = vld [vmem:[%s3352_s20 + $0x70] sm:$0xff]  ;;  %v3406_v43 = vpack.c.bf16 %v459_v34, %v458_v29  ;;  %v460_v44 = vld [vmem:[%s3352_s20 + $0x60] sm:$0xff]  ;;  %v535_v34 = vshll.u32 %v3359_v16, 16 }
  0x22   : > { %v463_v45 = vld [vmem:[%s3352_s20 + $0x78] sm:$0xff]  ;;  %v3412_v46 = vpack.c.bf16 %v457_v38, %v456_v33  ;;  %v461_v48 = vld [vmem:[%s3352_s20 + $0x68] sm:$0xff]  ;;  %v464_v52 = vld [vmem:[%s3352_s20 + $0x80] sm:$0xff]  ;;  %v528_v29 = vshll.u32 %v3371_v22, 16  ;;  %v4772_v33 = vmov 0  ;;  %s3150_s17 = sshll.u32 %s3227_s15, 4  ;;  %s3151_s17 = int_to_ptr.vmem [resolvable:$false] %s3150_s17 }
  0x23   : > { %v520_v35 = vrot.slane %v518_v26, 7  ;;  %v700_v42 = vrot.slane %v521_v31, 1  ;;  %v3423_v51 = vpack.c.bf16 %v463_v45, %v462_v41  ;;  %v465_v53 = vld [vmem:[%s3352_s20 + $0x88] sm:$0xff]  ;;  %v3429_v54 = vpack.c.bf16 %v461_v48, %v460_v44  ;;  %vm3435_vm3 = vmand %vm760_vm0, %vm761_vm1  ;;  %v466_v57 = vld [vmem:[%s3352_s20 + $0x90] sm:$0xff]  ;;  %s3152_s18 = scalar_lea.vmem %s3151_s17, 8192 }
  0x24   : > { %809 = vrot.lane.b32.xlu1 %v3368_v21, %s3226_s8  ;;  %1135 = vmatpush1.bf16.msra.mxu0 %v3053_v25  ;;  %v3063_v58 = vld [vmem:[%s4759_s3 + $0x74] ss:$8 sps:$4 sm:$0xff]   ;;  %v3065_v61 = vld [vmem:[%s4759_s3 + $0x70] ss:$8 sps:$4 sm:$0xff]   ;;  %v3066_v62 = vld [vmem:[%s4759_s3 + $0x84] ss:$8 sps:$4 sm:$0xff]   ;;  %v3459_v0 = vpack.c.bf16 %v465_v53, %v464_v52 }
  0x25   : > { %805 = vrot.lane.b32.xlu0 %v3371_v22, %s3226_s8  ;;  %1136 = vmatprep.subr.bf16.mxu0 %v3054_v30  ;;  %v3401_v40 = vor.u32 %v521_v31, %v520_v35  ;;  %v701_v50 = vor.u32 %v700_v42, %v518_v26  ;;  %v467_v60 = vld [vmem:[%s3352_s20 + $0x98] sm:$0xff]  ;;  %v3068_v1 = vld [vmem:[%s4759_s3 + $0x80] ss:$8 sps:$4 sm:$0xff]   ;;  %v3072_v7 = vld [vmem:[%s4759_s3 + $0xa4] ss:$8 sps:$4 sm:$0xff]   ;;  %v525_v30 = vshrl.u32 %v3371_v22, 16 }
  0x26   : > { %v3455_v63 = vpack.c.bf16 %v467_v60, %v466_v57  ;;  %v3069_v2 = vld [vmem:[%s4759_s3 + $0x94] ss:$8 sps:$4 sm:$0xff]   ;;  %v468_v3 = vld [vmem:[%s3352_s20 + $0xa0] sm:$0xff]  ;;  %v469_v4 = vld [vmem:[%s3352_s20 + $0xa8] sm:$0xff]  ;;  %v702_v31 = vrot.slane %v528_v29, 1  ;;  %v532_v22 = vshrl.u32 %v3359_v16, 16 }
  0x27   : > { %v763_v59 = vsel %vm3435_vm3, %v701_v50, 0  ;;  %v3473_v5 = vpack.c.bf16 %v469_v4, %v468_v3  ;;  %v3071_v6 = vld [vmem:[%s4759_s3 + $0x90] ss:$8 sps:$4 sm:$0xff]   ;;  %v3074_v8 = vld [vmem:[%s4759_s3 + $0xa0] ss:$8 sps:$4 sm:$0xff]   ;;  %vm3524_vm6 = vmand %vm677_vm4, %vm678_vm5  ;;  %v704_v44 = vrot.slane %v535_v34, 1 }
  0x28   : > { %813 = vrot.lane.b32.xlu1 %v3386_v32, %s3226_s8  ;;  %1137 = vmatpush1.bf16.msra.mxu0 %v3056_v37  ;;  %v470_v9 = vld [vmem:[%s3352_s20 + $0xb0] sm:$0xff]  ;;  %v471_v10 = vld [vmem:[%s3352_s20 + $0xb8] sm:$0xff]  ;;  %v472_v14 = vld [vmem:[%s3352_s20 + $0xc0] sm:$0xff]  ;;  %v4773_v33 = vsel %vm3524_vm6, 4294967295, %v4772_v33  ;;  %v703_v35 = vor.u32 %v702_v31, %v525_v30  ;;  %v527_v37 = vrot.slane %v525_v30, 7  ;;  %v680_v38 = vsel %vm3524_vm6, 0, %v3401_v40 }
  0x29   : > { %811 = vrot.lane.b32.xlu0 %v3392_v36, %s3226_s8  ;;  %1138 = vmatprep.subr.bf16.mxu0 %v3057_v39  ;;  %v3075_v11 = vld [vmem:[%s4759_s3 + $0xb4] ss:$8 sps:$4 sm:$0xff]   ;;  %v3491_v12 = vpack.c.bf16 %v471_v10, %v470_v9  ;;  %v3077_v13 = vld [vmem:[%s4759_s3 + $0xb0] ss:$8 sps:$4 sm:$0xff]   ;;  %v473_v15 = vld [vmem:[%s3352_s20 + $0xc8] sm:$0xff]  ;;  %4774 = vst [vmem:[#allocation5_spill] sm:$0xff] %v4773_v33  ;;  %v705_v48 = vor.u32 %v704_v44, %v532_v22 }
  0x2a   : > { %2909 = vmatprep.mubr.msk.bf16.mxu0 %vm843_vm2, %v763_v59  ;;  %v3500_v17 = vpack.c.bf16 %v473_v15, %v472_v14  ;;  %v474_v18 = vld [vmem:[%s3352_s20 + $0xd0] sm:$0xff]  ;;  %v475_v19 = vld [vmem:[%s3352_s20 + $0xd8] sm:$0xff]  ;;  %v476_v23 = vld [vmem:[%s3352_s20 + $0xe0] sm:$0xff]  ;;  %v764_v41 = vsel %vm3435_vm3, %v703_v35, 0  ;;  %v530_v42 = vor.u32 %v528_v29, %v527_v37  ;;  %v542_v40 = vshll.u32 %v3368_v21, 16 }
  0x2b   : > { %v3506_v20 = vpack.c.bf16 %v475_v19, %v474_v18  ;;  %v477_v24 = vld [vmem:[%s3352_s20 + $0xe8] sm:$0xff]  ;;  %v478_v26 = vld [vmem:[%s3352_s20 + $0xf0] sm:$0xff]  ;;  %v479_v27 = vld [vmem:[%s3352_s20 + $0xf8] sm:$0xff]  ;;  %v765_v59 = vsel %vm3435_vm3, %v705_v48, 0  ;;  %v546_v9 = vshrl.u32 %v3392_v36, 16 }
  0x2c   : > { %817 = vrot.lane.b32.xlu1 %v3406_v43, %s3226_s8  ;;  %1139 = vmatpush1.bf16.msra.mxu0 %v3059_v47  ;;  %v3512_v25 = vpack.c.bf16 %v477_v24, %v476_v23  ;;  %v3518_v28 = vpack.c.bf16 %v479_v27, %v478_v26  ;;  %v681_v16 = vsel %vm3524_vm6, 0, %v530_v42  ;;  %v489_v50 = vld [vmem:[%s3541_s22] sm:$0xff]  ;;  %v490_v52 = vld [vmem:[%s3541_s22 + $0x8] sm:$0xff]  ;;  %v563_v27 = vshll.u32 %v3412_v46, 16 }
  0x2d   : > { %815 = vrot.lane.b32.xlu0 %v3412_v46, %s3226_s8  ;;  %1140 = vmatprep.subr.bf16.mxu0 %v3060_v49  ;;  %v534_v49 = vrot.slane %v532_v22, 7  ;;  %v493_v53 = vmul.f32 0.0, %v489_v50  ;;  %v548_v18 = vrot.slane %v546_v9, 7 }
  0x2f   : > { %v537_v60 = vor.u32 %v535_v34, %v534_v49  ;;  %v577_v49 = vshll.u32 %v3429_v54, 16 }
  0x30   : > { %821 = vrot.lane.b32.xlu1 %v3423_v51, %s3226_s8  ;;  %1141 = vmatpush1.bf16.msra.mxu0 %v3062_v55  ;;  %v494_v55 = vmul.f32 0.0, %v490_v52 }
  0x31   : > { %819 = vrot.lane.b32.xlu0 %v3429_v54, %s3226_s8  ;;  %1142 = vmatprep.subr.bf16.mxu0 %v3063_v58  ;;  %v682_v3 = vsel %vm3524_vm6, 0, %v537_v60 }
  0x32   : > { %v3549_v58 = vpack.c.bf16 %v494_v55, %v493_v53 }
  0x34   : > { %825 = vrot.lane.b32.xlu1 %v3455_v63, %s3226_s8  ;;  %1143 = vmatpush1.bf16.msra.mxu0 %v3065_v61  ;;  %v539_v61 = vshrl.u32 %v3368_v21, 16 }
  0x35   : > { %823 = vrot.lane.b32.xlu0 %v3459_v0, %s3226_s8  ;;  %1144 = vmatprep.subr.bf16.mxu0 %v3066_v62  ;;  %v706_v62 = vrot.slane %v542_v40, 1 }
  0x37   : > { %v707_v4 = vor.u32 %v706_v62, %v539_v61  ;;  %v584_v62 = vshll.u32 %v3423_v51, 16 }
  0x38   : > { %1145 = vmatpush1.bf16.msra.mxu0 %v3068_v1  ;;  %829 = vrot.lane.b32.xlu1 %v3491_v12, %s3226_s8  ;;  %v549_v1 = vshll.u32 %v3392_v36, 16  ;;  %v553_v36 = vshrl.u32 %v3386_v32, 16 }
  0x39   : > { %827 = vrot.lane.b32.xlu0 %v3473_v5, %s3226_s8  ;;  %1146 = vmatprep.subr.bf16.mxu0 %v3069_v2  ;;  %v766_v21 = vsel %vm3435_vm3, %v707_v4, 0 }
  0x3a   : > { %v708_v10 = vrot.slane %v549_v1, 1  ;;  %v551_v24 = vor.u32 %v549_v1, %v548_v18  ;;  %v555_v34 = vrot.slane %v553_v36, 7 }
  0x3c   : > { %1147 = vmatpush1.bf16.msra.mxu0 %v3071_v6  ;;  %833 = vrot.lane.b32.xlu1 %v3506_v20, %s3226_s8  ;;  %v541_v6 = vrot.slane %v539_v61, 7  ;;  %v709_v15 = vor.u32 %v708_v10, %v546_v9  ;;  %v684_v30 = vsel %vm3524_vm6, 0, %v551_v24  ;;  %v716_v61 = vrot.slane %v577_v49, 1 }
  0x3d   : > { %1148 = vmatprep.subr.bf16.mxu0 %v3072_v7  ;;  %831 = vrot.lane.b32.xlu0 %v3500_v17, %s3226_s8  ;;  %v591_v9 = vshll.u32 %v3459_v0, 16  ;;  %v598_v24 = vshll.u32 %v3455_v63, 16 }
  0x3e   : > { %v767_v23 = vsel %vm3435_vm3, %v709_v15, 0 }
  0x40   : > { %1149 = vmatpush1.bf16.msra.mxu0 %v3074_v8  ;;  %837 = vrot.lane.b32.xlu1 %v3518_v28, %s3226_s8  ;;  %v544_v8 = vor.u32 %v542_v40, %v541_v6 }
  0x41   : > { %1150 = vmatprep.subr.bf16.mxu0 %v3075_v11  ;;  %835 = vrot.lane.b32.xlu0 %v3512_v25, %s3226_s8  ;;  %v556_v11 = vshll.u32 %v3386_v32, 16  ;;  %v560_v32 = vshrl.u32 %v3412_v46, 16  ;;  %v567_v46 = vshrl.u32 %v3406_v43, 16 }
  0x42   : > { %v683_v14 = vsel %vm3524_vm6, 0, %v544_v8  ;;  %v718_v8 = vrot.slane %v584_v62, 1 }
  0x43   : > { %v710_v26 = vrot.slane %v556_v11, 1  ;;  %v569_v55 = vrot.slane %v567_v46, 7 }
  0x44   : > { %1151 = vmatpush1.bf16.msra.mxu0 %v3077_v13 }
  0x45   : > { %839 = vrot.lane.b32.xlu0 %v3549_v58, %s3226_s8  ;;  %v711_v31 = vor.u32 %v710_v26, %v553_v36 }
  0x47   : > { %v768_v37 = vsel %vm3435_vm3, %v711_v31, 0 }
  0x92   : > { %v808_v2 = vpop.permute.xlu1 %807 }
  0x93   : > { %v804_v39 = vpop.permute.xlu0 %803  ;;  %v854_v7 = vsel %vm843_vm2, %v682_v3, %v808_v2 }
  0x94   : > { %v846_v45 = vsel %vm843_vm2, %v680_v38, %v804_v39  ;;  %v558_v38 = vor.u32 %v556_v11, %v555_v34  ;;  %v712_v39 = vrot.slane %v563_v27, 1 }
  0x95   : > { %1161 = vmatmul.mubr.bf16.vlgmr.msra.gmra.mrb[0].mxu0 %v846_v45  ;;  %v562_v45 = vrot.slane %v560_v32, 7 }
  0x96   : > { %2910 = vmatprep.mubr.msk.bf16.mxu0 %vm843_vm2, %v764_v41  ;;  %v810_v13 = vpop.permute.xlu1 %809  ;;  %v570_v41 = vshll.u32 %v3406_v43, 16  ;;  %v685_v22 = vsel %vm3524_vm6, 0, %v558_v38  ;;  %v713_v44 = vor.u32 %v712_v39, %v560_v32  ;;  %v574_v43 = vshrl.u32 %v3429_v54, 16 }
  0x97   : > { %v806_v47 = vpop.permute.xlu0 %805  ;;  %v858_v19 = vsel %vm843_vm2, %v683_v14, %v810_v13  ;;  %v581_v54 = vshrl.u32 %v3423_v51, 16  ;;  %v588_v51 = vshrl.u32 %v3459_v0, 16  ;;  %v595_v0 = vshrl.u32 %v3455_v63, 16 }
  0x98   : > { %v850_v57 = vsel %vm843_vm2, %v681_v16, %v806_v47  ;;  %v769_v47 = vsel %vm3435_vm3, %v713_v44, 0  ;;  %v565_v16 = vor.u32 %v563_v27, %v562_v45  ;;  %v714_v48 = vrot.slane %v570_v41, 1 }
  0x99   : > { %v572_v60 = vor.u32 %v570_v41, %v569_v55  ;;  %v717_v3 = vor.u32 %v716_v61, %v574_v43  ;;  %v576_v4 = vrot.slane %v574_v43, 7  ;;  %v719_v13 = vor.u32 %v718_v8, %v581_v54 }
  0x9a   : > { %v814_v42 = vpop.permute.xlu1 %813  ;;  %v686_v52 = vsel %vm3524_vm6, 0, %v565_v16  ;;  %v715_v53 = vor.u32 %v714_v48, %v567_v46  ;;  %v583_v14 = vrot.slane %v581_v54, 7  ;;  %v597_v41 = vrot.slane %v595_v0, 7 }
  0x9b   : > { %v812_v29 = vpop.permute.xlu0 %811  ;;  %v866_v40 = vsel %vm843_vm2, %v685_v22, %v814_v42  ;;  %v687_v2 = vsel %vm3524_vm6, 0, %v572_v60  ;;  %v772_v18 = vsel %vm3435_vm3, %v719_v13, 0  ;;  %v602_v44 = vshrl.u32 %v3473_v5, 16 }
  0x9c   : > { %v862_v35 = vsel %vm843_vm2, %v684_v30, %v812_v29  ;;  %v590_v29 = vrot.slane %v588_v51, 7  ;;  %v600_v63 = vor.u32 %v598_v24, %v597_v41  ;;  %v609_v60 = vshrl.u32 %v3491_v12, 16 }
  0x9d   : > { %1169 = vmatmul.mubr.bf16.gmra.mrb[4].mxu0 %v850_v57  ;;  %v604_v48 = vrot.slane %v602_v44, 7  ;;  %v619_v61 = vshll.u32 %v3500_v17, 16  ;;  %v626_v54 = vshll.u32 %v3506_v20, 16 }
  0x9e   : > { %2911 = vmatprep.mubr.msk.bf16.mxu0 %vm843_vm2, %v765_v59  ;;  %v770_v59 = vsel %vm3435_vm3, %v715_v53, 0  ;;  %v818_v1 = vpop.permute.xlu1 %817  ;;  %v593_v34 = vor.u32 %v591_v9, %v590_v29  ;;  %v691_v16 = vsel %vm3524_vm6, 0, %v600_v63 }
  0x9f   : > { %v816_v50 = vpop.permute.xlu0 %815  ;;  %v874_v6 = vsel %vm843_vm2, %v687_v2, %v818_v1 }
  0xa0   : > { %v870_v57 = vsel %vm843_vm2, %v686_v52, %v816_v50  ;;  %v690_v32 = vsel %vm3524_vm6, 0, %v593_v34  ;;  %v492_v50 = vld [vmem:[%s3541_s22 + $0x18] sm:$0xff] }
  0xa1   : > { %v496_v53 = vmul.f32 0.0, %v492_v50  ;;  %v644_v50 = vshrl.u32 %v3549_v58, 16 }
  0xa2   : > { %v822_v36 = vpop.permute.xlu1 %821 }
  0xa3   : > { %v820_v10 = vpop.permute.xlu0 %819 }
  0xa5   : > { %1177 = vmatmul.mubr.bf16.gmra.mrb[8].mxu0 %v854_v7  ;;  %v771_v7 = vsel %vm3435_vm3, %v717_v3, 0  ;;  %v611_v3 = vrot.slane %v609_v60, 7 }
  0xa6   : > { %2912 = vmatprep.mubr.msk.bf16.mxu0 %vm843_vm2, %v766_v21  ;;  %v579_v21 = vor.u32 %v577_v49, %v576_v4  ;;  %v491_v49 = vld [vmem:[%s3541_s22 + $0x10] sm:$0xff]  ;;  %s4432_s22 = scalar_lea.vmem [#allocation2], %s2878_s21 }
  0xa7   : > { %v824_v38 = vpop.permute.xlu0 %823  ;;  %v495_v52 = vmul.f32 0.0, %v491_v49  ;;  %s2749_s30 = sshll.u32 %s4432_s22, 4  ;;  %s4701_s30 = int_to_ptr.vmem [resolvable:$true] %s2749_s30 }
  0xa8   : > { %v688_v11 = vsel %vm3524_vm6, 0, %v579_v21  ;;  %v886_v42 = vsel %vm843_vm2, %v690_v32, %v824_v38  ;;  %v728_v21 = vrot.slane %v619_v61, 1  ;;  %s3146_s12 = scalar_lea.vmem %s4701_s30, 4096  ;;  %p3153_p1 = scmp.lt.s32.totalorder %s4701_s30, %s3151_s17 }
  0xa9   : > { %v878_v15 = vsel %vm843_vm2, %v688_v11, %v820_v10  ;;  %p3147_p12 = scmp.ne.s32.totalorder %s4701_s30, %s3146_s12  ;;  %p3154_p2 = scmp.lt.s32.totalorder %s3152_s18, %s3146_s12 }
  0xab   : > { %p3148_p13 = pnand %p3147_p12, %p3310_p4  ;;  %p3155_p3 = por %p3154_p2, %p3153_p1 }
  0xad   : > { %1187 = vmatmul.mubr.bf16.gmra.mrb[12].mxu0 %v858_v19  ;;  %v586_v19 = vor.u32 %v584_v62, %v583_v14  ;;  %v828_v62 = vpop.permute.xlu0 %827  ;;  %p3149_p0 = pneg %p3148_p13 }
  0xae   : > { %2913 = vmatprep.mubr.msk.bf16.mxu0 %vm843_vm2, %v767_v23  ;;  %v720_v23 = vrot.slane %v591_v9, 1 }
  0xaf   : > { %v689_v26 = vsel %vm3524_vm6, 0, %v586_v19  ;;  %v633_v19 = vshll.u32 %v3512_v25, 16  ;;  %p3156_p5 = pnand %p3155_p3, %p3149_p0 }
  0xb0   : > { %v721_v27 = vor.u32 %v720_v23, %v588_v51  ;;  %v882_v30 = vsel %vm843_vm2, %v689_v26, %v822_v36 }
  0xb1   : > { %v832_v51 = vpop.permute.xlu0 %831 }
  0xb2   : > { %v773_v31 = vsel %vm3435_vm3, %v721_v27, 0 }
  0xb5   : > { %1197 = vmatmul.mubr.bf16.gmra.mrb[16].mxu0 %v862_v35  ;;  %v722_v35 = vrot.slane %v598_v24, 1 }
  0xb6   : > { %2914 = vmatprep.mubr.msk.bf16.mxu0 %vm843_vm2, %v768_v37  ;;  %v605_v37 = vshll.u32 %v3473_v5, 16 }
  0xb7   : > { %v723_v39 = vor.u32 %v722_v35, %v595_v0 }
  0xb8   : > { %v724_v45 = vrot.slane %v605_v37, 1 }
  0xb9   : > { %v774_v22 = vsel %vm3435_vm3, %v723_v39, 0 }
  0xba   : > { %v725_v46 = vor.u32 %v724_v45, %v602_v44 }
  0xbc   : > { %v775_v5 = vsel %vm3435_vm3, %v725_v46, 0 }
  0xbd   : > { %1207 = vmatmul.mubr.bf16.gmra.mrb[20].mxu0 %v866_v40  ;;  %v612_v40 = vshll.u32 %v3491_v12, 16 }
  0xbe   : > { %2915 = vmatprep.mubr.msk.bf16.mxu0 %vm843_vm2, %v769_v47  ;;  %v826_v47 = vpop.permute.xlu1 %825 }
  0xbf   : > { %v890_v55 = vsel %vm843_vm2, %v691_v16, %v826_v47  ;;  %v726_v43 = vrot.slane %v612_v40, 1 }
  0xc1   : > { %v727_v2 = vor.u32 %v726_v43, %v609_v60 }
  0xc2   : > { %v830_v8 = vpop.permute.xlu1 %829 }
  0xc3   : > { %v776_v12 = vsel %vm3435_vm3, %v727_v2, 0 }
  0xc5   : > { %1217 = vmatmul.mubr.bf16.gmra.mrb[24].mxu0 %v870_v57  ;;  %v3635_v57 = vpack.c.bf16 %v496_v53, %v495_v52 }
  0xc6   : > { %2916 = vmatprep.mubr.msk.bf16.mxu0 %vm843_vm2, %v770_v59  ;;  %v607_v59 = vor.u32 %v605_v37, %v604_v48  ;;  %v834_v34 = vpop.permute.xlu1 %833  ;;  %v647_v48 = vshll.u32 %v3549_v58, 16 }
  0xc7   : > { %841 = vrot.lane.b32.xlu1 %v3635_v57, %s3226_s8  ;;  %v654_v49 = vshll.u32 %v3635_v57, 16  ;;  %v651_v53 = vshrl.u32 %v3635_v57, 16 }
  0xc8   : > { %v692_v1 = vsel %vm3524_vm6, 0, %v607_v59  ;;  %v736_v52 = vrot.slane %v647_v48, 1  ;;  %v646_v59 = vrot.slane %v644_v50, 7 }
  0xc9   : > { %v894_v4 = vsel %vm843_vm2, %v692_v1, %v828_v62  ;;  %v653_v57 = vrot.slane %v651_v53, 7 }
  0xca   : > { %v649_v62 = vor.u32 %v647_v48, %v646_v59  ;;  %v3081_v48 = vld [vmem:[%s4761_s5 + $0x14] ss:$8 sps:$4 sm:$0xff]  }
  0xcb   : > { %v3087_v59 = vld [vmem:[%s4761_s5 + $0x34] ss:$8 sps:$4 sm:$0xff]  }
  0xcc   : > { %v698_v1 = vsel %vm3524_vm6, 0, %v649_v62 }
  0xcd   : > { %1227 = vmatmul.mubr.bf16.gmra.mrb[28].mxu0 %v874_v6  ;;  %v614_v6 = vor.u32 %v612_v40, %v611_v3  ;;  %v656_v3 = vor.u32 %v654_v49, %v653_v57  ;;  %v3093_v57 = vld [vmem:[%s4761_s5 + $0x54] ss:$8 sps:$4 sm:$0xff]  }
  0xce   : > { %2917 = vmatprep.mubr.msk.bf16.mxu0 %vm843_vm2, %v771_v7  ;;  %v616_v7 = vshrl.u32 %v3500_v17, 16  ;;  %v623_v17 = vshrl.u32 %v3506_v20, 16  ;;  %v630_v20 = vshrl.u32 %v3512_v25, 16  ;;  %v637_v25 = vshrl.u32 %v3518_v28, 16 }
  0xcf   : > { %v693_v9 = vsel %vm3524_vm6, 0, %v614_v6 }
  0xd0   : > { %v729_v10 = vor.u32 %v728_v21, %v616_v7  ;;  %v618_v11 = vrot.slane %v616_v7, 7  ;;  %v898_v13 = vsel %vm843_vm2, %v693_v9, %v830_v8  ;;  %v625_v36 = vrot.slane %v623_v17, 7 }
  0xd1   : > { %v632_v37 = vrot.slane %v630_v20, 7  ;;  %v639_v44 = vrot.slane %v637_v25, 7 }
  0xd2   : > { %v777_v14 = vsel %vm3435_vm3, %v729_v10, 0  ;;  %v628_v29 = vor.u32 %v626_v54, %v625_v36 }
  0xd3   : > { %v635_v39 = vor.u32 %v633_v19, %v632_v37 }
  0xd4   : > { %v695_v0 = vsel %vm3524_vm6, 0, %v628_v29 }
  0xd5   : > { %1237 = vmatmul.mubr.bf16.gmra.mrb[32].mxu0 %v878_v15  ;;  %v621_v15 = vor.u32 %v619_v61, %v618_v11  ;;  %v906_v38 = vsel %vm843_vm2, %v695_v0, %v834_v34 }
  0xd6   : > { %2918 = vmatprep.mubr.msk.bf16.mxu0 %vm843_vm2, %v772_v18  ;;  %v730_v18 = vrot.slane %v626_v54, 1 }
  0xd7   : > { %v694_v23 = vsel %vm3524_vm6, 0, %v621_v15 }
  0xd8   : > { %v731_v24 = vor.u32 %v730_v18, %v623_v17  ;;  %v902_v26 = vsel %vm843_vm2, %v694_v23, %v832_v51 }
  0xda   : > { %v778_v27 = vsel %vm3435_vm3, %v731_v24, 0 }
  0xdd   : > { %1247 = vmatmul.mubr.bf16.gmra.mrb[36].mxu0 %v882_v30  ;;  %v732_v30 = vrot.slane %v633_v19, 1 }
  0xde   : > { %2919 = vmatprep.mubr.msk.bf16.mxu0 %vm843_vm2, %v773_v31  ;;  %v640_v31 = vshll.u32 %v3518_v28, 16  ;;  %v838_v28 = vpop.permute.xlu1 %837 }
  0xdf   : > { %v733_v35 = vor.u32 %v732_v30, %v630_v20 }
  0xe0   : > { %v734_v41 = vrot.slane %v640_v31, 1  ;;  %v642_v47 = vor.u32 %v640_v31, %v639_v44 }
  0xe1   : > { %v779_v32 = vsel %vm3435_vm3, %v733_v35, 0 }
  0xe2   : > { %v735_v63 = vor.u32 %v734_v41, %v637_v25  ;;  %v697_v16 = vsel %vm3524_vm6, 0, %v642_v47 }
  0xe3   : > { %v914_v46 = vsel %vm843_vm2, %v697_v16, %v838_v28  ;;  %v3078_v28 = vld [vmem:[%s4761_s5 + $0x4] ss:$8 sps:$4 sm:$0xff]   ;;  %v3080_v16 = vld [vmem:[%s4761_s5] ss:$8 sps:$4 sm:$0xff]  }
  0xe4   : > { %v780_v40 = vsel %vm3435_vm3, %v735_v63, 0  ;;  %2230 = vmatprep.subr.bf16.mxu1 %v3078_v28 }
  0xe5   : > { %1257 = vmatmul.mubr.bf16.gmra.mrb[40].mxu0 %v886_v42  ;;  %v836_v42 = vpop.permute.xlu0 %835  ;;  %2231 = vmatpush1.bf16.msra.mxu1 %v3080_v16  ;;  %v3101_v16 = vld [vmem:[%s4761_s5 + $0x70] ss:$8 sps:$4 sm:$0xff]  }
  0xe6   : > { %2920 = vmatprep.mubr.msk.bf16.mxu0 %vm843_vm2, %v774_v22  ;;  %v696_v22 = vsel %vm3524_vm6, 0, %v635_v39  ;;  %2232 = vmatprep.subr.bf16.mxu1 %v3081_v48  ;;  %v3102_v48 = vld [vmem:[%s4761_s5 + $0x84] ss:$8 sps:$4 sm:$0xff]  }
  0xe7   : > { %v910_v45 = vsel %vm843_vm2, %v696_v22, %v836_v42 }
  0xe9   : > { %v840_v43 = vpop.permute.xlu0 %839 }
  0xea   : > { %v918_v2 = vsel %vm843_vm2, %v698_v1, %v840_v43  ;;  %v3089_v43 = vld [vmem:[%s4761_s5 + $0x30] ss:$8 sps:$4 sm:$0xff]  }
  0xed   : > { %1267 = vmatmul.mubr.bf16.gmra.mrb[44].mxu0 %v890_v55  ;;  %v738_v55 = vrot.slane %v654_v49, 1  ;;  %v3083_v49 = vld [vmem:[%s4761_s5 + $0x10] ss:$8 sps:$4 sm:$0xff]  }
  0xee   : > { %2921 = vmatprep.mubr.msk.bf16.mxu0 %vm843_vm2, %v775_v5  ;;  %v737_v5 = vor.u32 %v736_v52, %v644_v50  ;;  %v3084_v50 = vld [vmem:[%s4761_s5 + $0x24] ss:$8 sps:$4 sm:$0xff]   ;;  %2233 = vmatpush1.bf16.msra.mxu1 %v3083_v49 }
  0xef   : > { %v739_v60 = vor.u32 %v738_v55, %v651_v53  ;;  %v3086_v55 = vld [vmem:[%s4761_s5 + $0x20] ss:$8 sps:$4 sm:$0xff]   ;;  %2234 = vmatprep.subr.bf16.mxu1 %v3084_v50 }
  0xf0   : > { %v781_v61 = vsel %vm3435_vm3, %v737_v5, 0 }
  0xf1   : > { %v782_v58 = vsel %vm3435_vm3, %v739_v60, 0 }
  0xf2   : > { %2235 = vmatpush1.bf16.msra.mxu1 %v3086_v55  ;;  %v3104_v55 = vld [vmem:[%s4761_s5 + $0x80] ss:$8 sps:$4 sm:$0xff]  }
  0xf3   : > { %2236 = vmatprep.subr.bf16.mxu1 %v3087_v59 }
  0xf5   : > { %1277 = vmatmul.mubr.bf16.gmra.mrb[48].mxu0 %v894_v4  ;;  %v699_v4 = vsel %vm3524_vm6, 0, %v656_v3 }
  0xf6   : > { %2922 = vmatprep.mubr.msk.bf16.mxu0 %vm843_vm2, %v776_v12  ;;  %2237 = vmatpush1.bf16.msra.mxu1 %v3089_v43  ;;  %v3105_v43 = vld [vmem:[%s4761_s5 + $0x94] ss:$8 sps:$4 sm:$0xff]  }
  0xfd   : > { %1287 = vmatmul.mubr.bf16.gmra.mrb[52].mxu0 %v898_v13 }
  0xfe   : > { %2923 = vmatprep.mubr.msk.bf16.mxu0 %vm843_vm2, %v777_v14 }
 0x105   : > { %1297 = vmatmul.mubr.bf16.gmra.mrb[56].mxu0 %v902_v26 }
 0x106   : > { %2924 = vmatprep.mubr.msk.bf16.mxu0 %vm843_vm2, %v778_v27 }
 0x10d   : > { %1307 = vmatmul.mubr.bf16.gmra.mrb[60].mxu0 %v906_v38 }
 0x10e   : > { %2925 = vmatprep.mubr.msk.bf16.mxu0 %vm843_vm2, %v779_v32 }
 0x115   : > { %1317 = vmatmul.mubr.bf16.gmra.mrb[64].mxu0 %v910_v45 }
 0x116   : > { %2926 = vmatprep.mubr.msk.bf16.mxu0 %vm843_vm2, %v780_v40 }
 0x11d   : > { %1327 = vmatmul.mubr.bf16.gmra.mrb[68].mxu0 %v914_v46 }
 0x11e   : > { %2927 = vmatprep.mubr.msk.bf16.mxu0 %vm843_vm2, %v781_v61  ;;  %v3090_v61 = vld [vmem:[%s4761_s5 + $0x44] ss:$8 sps:$4 sm:$0xff]  }
 0x11f   : > { %2238 = vmatprep.subr.bf16.mxu1 %v3090_v61 }
 0x125   : > { %1337 = vmatmul.mubr.bf16.gmra.mrb[72].mxu0 %v918_v2 }
 0x126   : > { %2928 = vmatprep.mubr.msk.bf16.mxu0 %vm843_vm2, %v782_v58  ;;  %v3092_v58 = vld [vmem:[%s4761_s5 + $0x40] ss:$8 sps:$4 sm:$0xff]  }
 0x127   : > { %2239 = vmatpush1.bf16.msra.mxu1 %v3092_v58  ;;  %v3107_v58 = vld [vmem:[%s4761_s5 + $0x90] ss:$8 sps:$4 sm:$0xff]  }
 0x128   : > { %2240 = vmatprep.subr.bf16.mxu1 %v3093_v57  ;;  %v3108_v57 = vld [vmem:[%s4761_s5 + $0xa4] ss:$8 sps:$4 sm:$0xff]  }
 0x139   : > { %v842_v12 = vpop.permute.xlu1 %841 }
 0x13a   : > { %v922_v6 = vsel %vm843_vm2, %v699_v4, %v842_v12  ;;  %v3095_v4 = vld [vmem:[%s4761_s5 + $0x50] ss:$8 sps:$4 sm:$0xff]   ;;  %v3096_v12 = vld [vmem:[%s4761_s5 + $0x64] ss:$8 sps:$4 sm:$0xff]  }
 0x13b   : > { %1347 = vmatmul.mubr.bf16.gmra.mrb[76].mxu0 %v922_v6  ;;  %2241 = vmatpush1.bf16.msra.mxu1 %v3095_v4 }
 0x13c   : > { %2242 = vmatprep.subr.bf16.mxu1 %v3096_v12 }
 0x168   : > { %v3700_v7 = vpop.f32.mrb[0].mxu0 }
 0x169   : > { %v1164_v21 = vpop.f32.mrb[1].mxu0 }
 0x16a   : > { %v3702_v54 = vpop.f32.mrb[2].mxu0 }
 0x16b   : > { %v1167_v8 = vpop.f32.mrb[3].mxu0 }
 0x16c   : > { %v3098_v8 = vld [vmem:[%s4761_s5 + $0x60] ss:$8 sps:$4 sm:$0xff]  }
 0x16d   : > { %2243 = vmatpush1.bf16.msra.mxu1 %v3098_v8  ;;  %v3110_v8 = vld [vmem:[%s4761_s5 + $0xa0] ss:$8 sps:$4 sm:$0xff]  }
 0x170   : > { %v3704_v9 = vpop.f32.mrb[4].mxu0 }
 0x171   : > { %v1172_v10 = vpop.f32.mrb[5].mxu0  ;;  %1391 = vrot.lane.b32.xlu0 %v3704_v9, %s3226_s8 }
 0x172   : > { %v3708_v11 = vpop.f32.mrb[6].mxu0 }
 0x173   : > { %v1175_v13 = vpop.f32.mrb[7].mxu0  ;;  %1393 = vrot.lane.b32.xlu1 %v3708_v11, %s3226_s8 }
 0x174   : > { %v3099_v13 = vld [vmem:[%s4761_s5 + $0x74] ss:$8 sps:$4 sm:$0xff]  }
 0x175   : > { %2244 = vmatprep.subr.bf16.mxu1 %v3099_v13 }
 0x176   : > { %2245 = vmatpush1.bf16.msra.mxu1 %v3101_v16  ;;  %v3111_v16 = vld [vmem:[%s4761_s5 + $0xb4] ss:$8 sps:$4 sm:$0xff]  }
 0x177   : > { %2246 = vmatprep.subr.bf16.mxu1 %v3102_v48 }
 0x178   : > { %v3712_v14 = vpop.f32.mrb[8].mxu0 }
 0x179   : > { %1395 = vrot.lane.b32.xlu0 %v3712_v14, %s3226_s8  ;;  %v3716_v15 = vpop.f32.mrb[9].mxu0 }
 0x17a   : > { %v3718_v17 = vpop.f32.mrb[10].mxu0  ;;  %2247 = vmatpush1.bf16.msra.mxu1 %v3104_v55  ;;  %v3113_v55 = vld [vmem:[%s4761_s5 + $0xb0] ss:$8 sps:$4 sm:$0xff]  }
 0x17b   : > { %1397 = vrot.lane.b32.xlu1 %v3718_v17, %s3226_s8  ;;  %v3722_v18 = vpop.f32.mrb[11].mxu0  ;;  %2248 = vmatprep.subr.bf16.mxu1 %v3105_v43 }
 0x17e   : > { %2249 = vmatpush1.bf16.msra.mxu1 %v3107_v58 }
 0x17f   : > { %2250 = vmatprep.subr.bf16.mxu1 %v3108_v57 }
 0x180   : > { %v3724_v19 = vpop.f32.mrb[12].mxu0 }
 0x181   : > { %1399 = vrot.lane.b32.xlu0 %v3724_v19, %s3226_s8  ;;  %v3728_v51 = vpop.f32.mrb[13].mxu0 }
 0x182   : > { %v3730_v23 = vpop.f32.mrb[14].mxu0  ;;  %2251 = vmatpush1.bf16.msra.mxu1 %v3110_v8  ;;  %v3934_v8 = vld [vmem:[%s4760_s4] ss:$0 sm:$0xff] }
 0x183   : > { %1401 = vrot.lane.b32.xlu1 %v3730_v23, %s3226_s8  ;;  %v3734_v24 = vpop.f32.mrb[15].mxu0  ;;  %2252 = vmatprep.subr.bf16.mxu1 %v3111_v16 }
 0x186   : > { %2253 = vmatpush1.bf16.msra.mxu1 %v3113_v55 }
 0x188   : > { %v3736_v36 = vpop.f32.mrb[16].mxu0 }
 0x189   : > { %1403 = vrot.lane.b32.xlu0 %v3736_v36, %s3226_s8  ;;  %v3740_v26 = vpop.f32.mrb[17].mxu0 }
 0x18a   : > { %v3742_v27 = vpop.f32.mrb[18].mxu0 }
 0x18b   : > { %1405 = vrot.lane.b32.xlu1 %v3742_v27, %s3226_s8  ;;  %v3746_v29 = vpop.f32.mrb[19].mxu0 }
 0x190   : > { %v3748_v20 = vpop.f32.mrb[20].mxu0 }
 0x191   : > { %1407 = vrot.lane.b32.xlu0 %v3748_v20, %s3226_s8  ;;  %v3752_v30 = vpop.f32.mrb[21].mxu0 }
 0x192   : > { %v3754_v31 = vpop.f32.mrb[22].mxu0 }
 0x193   : > { %1409 = vrot.lane.b32.xlu1 %v3754_v31, %s3226_s8  ;;  %v3758_v34 = vpop.f32.mrb[23].mxu0 }
 0x198   : > { %v3760_v0 = vpop.f32.mrb[24].mxu0 }
 0x199   : > { %1411 = vrot.lane.b32.xlu0 %v3760_v0, %s3226_s8  ;;  %v3764_v35 = vpop.f32.mrb[25].mxu0 }
 0x19a   : > { %v3766_v37 = vpop.f32.mrb[26].mxu0 }
 0x19b   : > { %1413 = vrot.lane.b32.xlu1 %v3766_v37, %s3226_s8  ;;  %v3770_v38 = vpop.f32.mrb[27].mxu0 }
 0x1a0   : > { %v3772_v32 = vpop.f32.mrb[28].mxu0 }
 0x1a1   : > { %1415 = vrot.lane.b32.xlu0 %v3772_v32, %s3226_s8  ;;  %v3776_v39 = vpop.f32.mrb[29].mxu0 }
 0x1a2   : > { %v3778_v25 = vpop.f32.mrb[30].mxu0 }
 0x1a3   : > { %1417 = vrot.lane.b32.xlu1 %v3778_v25, %s3226_s8  ;;  %v3782_v41 = vpop.f32.mrb[31].mxu0 }
 0x1a8   : > { %v3784_v42 = vpop.f32.mrb[32].mxu0 }
 0x1a9   : > { %1419 = vrot.lane.b32.xlu0 %v3784_v42, %s3226_s8  ;;  %v3788_v22 = vpop.f32.mrb[33].mxu0 }
 0x1aa   : > { %v3790_v63 = vpop.f32.mrb[34].mxu0 }
 0x1ab   : > { %1421 = vrot.lane.b32.xlu1 %v3790_v63, %s3226_s8  ;;  %v3794_v44 = vpop.f32.mrb[35].mxu0 }
 0x1b0   : > { %v3796_v45 = vpop.f32.mrb[36].mxu0 }
 0x1b1   : > { %1423 = vrot.lane.b32.xlu0 %v3796_v45, %s3226_s8  ;;  %v3800_v40 = vpop.f32.mrb[37].mxu0 }
 0x1b2   : > { %v3802_v47 = vpop.f32.mrb[38].mxu0 }
 0x1b3   : > { %4775 = vst [vmem:[#allocation6_spill] sm:$0xff] %v3802_v47  ;;  %1425 = vrot.lane.b32.xlu1 %v3802_v47, %s3226_s8  ;;  %v3812_v46 = vpop.f32.mrb[39].mxu0 }
 0x1b8   : > { %v3823_v52 = vpop.f32.mrb[40].mxu0 }
 0x1b9   : > { %4776 = vst [vmem:[#allocation7_spill] sm:$0xff] %v3823_v52  ;;  %1427 = vrot.lane.b32.xlu1 %v3823_v52, %s3226_s8  ;;  %v3827_v53 = vpop.f32.mrb[41].mxu0 }
 0x1ba   : > { %v3832_v5 = vpop.f32.mrb[42].mxu0 }
 0x1bb   : > { %v3837_v60 = vpop.f32.mrb[43].mxu0 }
 0x1c0   : > { %v3845_v62 = vpop.f32.mrb[44].mxu0 }
 0x1c1   : > { %v3847_v1 = vpop.f32.mrb[45].mxu0 }
 0x1c2   : > { %4777 = vst [vmem:[#allocation8_spill] sm:$0xff] %v3847_v1  ;;  %v3852_v2 = vpop.f32.mrb[46].mxu0 }
 0x1c3   : > { %v3857_v3 = vpop.f32.mrb[47].mxu0 }
 0x1c4   : > { %4778 = vst [vmem:[#allocation9_spill] sm:$0xff] %v3857_v3 }
 0x1c8   : > { %v3865_v6 = vpop.f32.mrb[48].mxu0 }
 0x1c9   : > { %v3867_v21 = vpop.f32.mrb[49].mxu0 }
 0x1ca   : > { %4779 = vst [vmem:[#allocation10_spill] sm:$0xff] %v3867_v21  ;;  %v3872_v10 = vpop.f32.mrb[50].mxu0 }
 0x1cb   : > { %v3877_v28 = vpop.f32.mrb[51].mxu0 }
 0x1cc   : > { %4780 = vst [vmem:[#allocation11_spill] sm:$0xff] %v3877_v28 }
 0x1d0   : > { %v3885_v49 = vpop.f32.mrb[52].mxu0 }
 0x1d1   : > { %v3887_v50 = vpop.f32.mrb[53].mxu0 }
 0x1d2   : > { %4781 = vst [vmem:[#allocation12_spill] sm:$0xff] %v3887_v50  ;;  %v3892_v59 = vpop.f32.mrb[54].mxu0 }
 0x1d3   : > { %v3897_v61 = vpop.f32.mrb[55].mxu0 }
 0x1d4   : > { %4782 = vst [vmem:[#allocation13_spill] sm:$0xff] %v3897_v61 }
 0x1d8   : > { %v3905_v4 = vpop.f32.mrb[56].mxu0 }
 0x1d9   : > { %v3907_v12 = vpop.f32.mrb[57].mxu0 }
 0x1da   : > { %4783 = vst [vmem:[#allocation14_spill] sm:$0xff] %v3907_v12  ;;  %v3912_v13 = vpop.f32.mrb[58].mxu0 }
 0x1db   : > { %v3917_v48 = vpop.f32.mrb[59].mxu0 }
 0x1dc   : > { %4784 = vst [vmem:[#allocation15_spill] sm:$0xff] %v3917_v48 }
 0x1e0   : > { %v3922_v43 = vpop.f32.mrb[60].mxu0 }
 0x1e1   : > { %v3924_v58 = vpop.f32.mrb[61].mxu0 }
 0x1e2   : > { %4785 = vst [vmem:[#allocation16_spill] sm:$0xff] %v3924_v58  ;;  %v3926_v12 = vpop.f32.mrb[62].mxu0 }
 0x1e3   : > { %v1392_v57 = vpop.permute.xlu0 %1391  ;;  %v3928_v61 = vpop.f32.mrb[63].mxu0 }
 0x1e4   : > { %4786 = vst [vmem:[#allocation17_spill] sm:$0xff] %v3928_v61  ;;  %v1499_v50 = vadd.f32 %v1392_v57, %v3700_v7 }
 0x1e5   : > { %v1394_v48 = vpop.permute.xlu1 %1393 }
 0x1e6   : > { %v1535_v16 = vadd.f32 %v1499_v50, %v3716_v15  ;;  %v1500_v28 = vadd.f32 %v1394_v48, %v3702_v54 }
 0x1e8   : > { %v1578_v58 = vadd.f32 %v3934_v8, %v1535_v16  ;;  %v1536_v55 = vadd.f32 %v1500_v28, %v3722_v18  ;;  %v3940_v21 = vpop.f32.mrb[64].mxu0 }
 0x1e9   : > { %v3942_v52 = vpop.f32.mrb[65].mxu0 }
 0x1ea   : > { %4787 = vst [vmem:[#allocation18_spill] sm:$0xff] %v3942_v52  ;;  %v1614_v61 = vmax.f32 %v1578_v58, 0.0  ;;  %v1579_v7 = vadd.f32 %v3934_v8, %v1536_v55  ;;  %v3945_v57 = vpop.f32.mrb[66].mxu0 }
 0x1eb   : > { %v1396_v3 = vpop.permute.xlu0 %1395  ;;  %v3947_v47 = vpop.f32.mrb[67].mxu0 }
 0x1ec   : > { %v1615_v33 = vmax.f32 %v1579_v7, 0.0  ;;  %v1501_v15 = vadd.f32 %v1396_v3, %v3704_v9  ;;  %v1650_v50 = vmul.f32 0.0, %v1614_v61 }
 0x1ed   : > { %v1398_v54 = vpop.permute.xlu1 %1397 }
 0x1ee   : > { %v1651_v48 = vmul.f32 0.0, %v1615_v33  ;;  %v1537_v18 = vadd.f32 %v1501_v15, %v3728_v51  ;;  %v1502_v28 = vadd.f32 %v1398_v54, %v3708_v11 }
 0x1f0   : > { %v1580_v16 = vadd.f32 %v3934_v8, %v1537_v18  ;;  %v1538_v58 = vadd.f32 %v1502_v28, %v3734_v24  ;;  %v1654_v55 = vpack.c.bf16 %v1651_v48, %v1650_v50  ;;  %v3954_v52 = vpop.f32.mrb[68].mxu0 }
 0x1f1   : > { %v3956_v1 = vpop.f32.mrb[69].mxu0 }
 0x1f2   : > { %v1581_v7 = vadd.f32 %v3934_v8, %v1538_v58  ;;  %1924 = vrot.lane.b32.xlu0 %v1654_v55, %s3226_s8  ;;  %v1673_v9 = vshrl.u32 %v1654_v55, 16  ;;  %v1676_v3 = vshll.u32 %v1654_v55, 16  ;;  %v3960_v33 = vpop.f32.mrb[70].mxu0  ;;  %v1616_v51 = vmax.f32 %v1580_v16, 0.0 }
 0x1f3   : > { %v1400_v61 = vpop.permute.xlu0 %1399  ;;  %v3962_v11 = vpop.f32.mrb[71].mxu0 }
 0x1f4   : > { %4788 = vst [vmem:[#allocation19_spill] sm:$0xff] %v3962_v11  ;;  %v1617_v15 = vmax.f32 %v1581_v7, 0.0  ;;  %v1503_v24 = vadd.f32 %v1400_v61, %v3712_v14  ;;  %v1675_v54 = vrot.slane %v1673_v9, 7  ;;  %v1834_v50 = vrot.slane %v1676_v3, 1 }
 0x1f5   : > { %v1402_v48 = vpop.permute.xlu1 %1401 }
 0x1f6   : > { %v1539_v18 = vadd.f32 %v1503_v24, %v3740_v26  ;;  %v1504_v28 = vadd.f32 %v1402_v48, %v3718_v17  ;;  %1429 = vrot.lane.b32.xlu0 %v3832_v5, %s3226_s8  ;;  %v3969_v58 = vpack.c.bf16 %v1617_v15, %v1616_v51  ;;  %v1835_v55 = vor.u32 %v1834_v50, %v1673_v9 }
 0x1f7   : > { %v3971_v16 = vor.u32 %v1676_v3, %v1675_v54 }
 0x1f8   : > { %v1582_v11 = vadd.f32 %v3934_v8, %v1539_v18  ;;  %v1540_v7 = vadd.f32 %v1504_v28, %v3746_v29  ;;  %1926 = vrot.lane.b32.xlu1 %v3969_v58, %s3226_s8  ;;  %v1888_v14 = vsel %vm3435_vm3, %v1835_v55, 0 }
 0x1f9   : > { %2954 = vmatprep.mubr.msk.bf16.mxu1 %vm843_vm2, %v1888_v14 }
 0x1fa   : > { %v1583_v17 = vadd.f32 %v3934_v8, %v1540_v7  ;;  %1431 = vrot.lane.b32.xlu0 %v3845_v62, %s3226_s8  ;;  %v1618_v9 = vmax.f32 %v1582_v11, 0.0 }
 0x1fb   : > { %v1404_v26 = vpop.permute.xlu0 %1403 }
 0x1fc   : > { %v1619_v3 = vmax.f32 %v1583_v17, 0.0  ;;  %v1505_v51 = vadd.f32 %v1404_v26, %v3724_v19  ;;  %1433 = vrot.lane.b32.xlu1 %v3852_v2, %s3226_s8 }
 0x1fd   : > { %v1406_v29 = vpop.permute.xlu1 %1405 }
 0x1fe   : > { %v1541_v61 = vadd.f32 %v1505_v51, %v3752_v30  ;;  %v1506_v15 = vadd.f32 %v1406_v29, %v3730_v23  ;;  %v3988_v24 = vpack.c.bf16 %v1619_v3, %v1618_v9 }
 0x200   : > { %v1584_v54 = vadd.f32 %v3934_v8, %v1541_v61  ;;  %v1542_v50 = vadd.f32 %v1506_v15, %v3758_v34  ;;  %1928 = vrot.lane.b32.xlu0 %v3988_v24, %s3226_s8  ;;  %1435 = vrot.lane.b32.xlu1 %v3865_v6, %s3226_s8 }
 0x202   : > { %v1585_v19 = vadd.f32 %v3934_v8, %v1542_v50  ;;  %v1620_v48 = vmax.f32 %v1584_v54, 0.0 }
 0x203   : > { %v1408_v11 = vpop.permute.xlu0 %1407 }
 0x204   : > { %v1621_v18 = vmax.f32 %v1585_v19, 0.0  ;;  %v1507_v30 = vadd.f32 %v1408_v11, %v3736_v36  ;;  %1437 = vrot.lane.b32.xlu0 %v3872_v10, %s3226_s8  ;;  %v4028_v19 = vpop.f32.mrb[72].mxu0 }
 0x205   : > { %v1410_v23 = vpop.permute.xlu1 %1409 }
 0x206   : > { %v1543_v28 = vadd.f32 %v1507_v30, %v3764_v35  ;;  %v1508_v34 = vadd.f32 %v1410_v23, %v3742_v27  ;;  %v4002_v55 = vpack.c.bf16 %v1621_v18, %v1620_v48 }
 0x208   : > { %v1586_v7 = vadd.f32 %v3934_v8, %v1543_v28  ;;  %v1544_v14 = vadd.f32 %v1508_v34, %v3770_v38  ;;  %1930 = vrot.lane.b32.xlu1 %v4002_v55, %s3226_s8  ;;  %1439 = vrot.lane.b32.xlu0 %v3885_v49, %s3226_s8 }
 0x20a   : > { %v1587_v36 = vadd.f32 %v3934_v8, %v1544_v14  ;;  %v1622_v26 = vmax.f32 %v1586_v7, 0.0 }
 0x20b   : > { %v1412_v17 = vpop.permute.xlu0 %1411 }
 0x20c   : > { %v1623_v9 = vmax.f32 %v1587_v36, 0.0  ;;  %v1509_v35 = vadd.f32 %v1412_v17, %v3748_v20  ;;  %1441 = vrot.lane.b32.xlu1 %v3892_v59, %s3226_s8 }
 0x20d   : > { %v1414_v27 = vpop.permute.xlu1 %1413 }
 0x20e   : > { %v1545_v3 = vadd.f32 %v1509_v35, %v3776_v39  ;;  %v1510_v38 = vadd.f32 %v1414_v27, %v3754_v31  ;;  %v4016_v51 = vpack.c.bf16 %v1623_v9, %v1622_v26 }
 0x210   : > { %v1588_v29 = vadd.f32 %v3934_v8, %v1545_v3  ;;  %v1546_v61 = vadd.f32 %v1510_v38, %v3782_v41  ;;  %1932 = vrot.lane.b32.xlu0 %v4016_v51, %s3226_s8  ;;  %1443 = vrot.lane.b32.xlu1 %v3905_v4, %s3226_s8 }
 0x212   : > { %v1589_v20 = vadd.f32 %v3934_v8, %v1546_v61  ;;  %v1624_v54 = vmax.f32 %v1588_v29, 0.0 }
 0x213   : > { %v1416_v15 = vpop.permute.xlu0 %1415 }
 0x214   : > { %v1625_v50 = vmax.f32 %v1589_v20, 0.0  ;;  %v1511_v39 = vadd.f32 %v1416_v15, %v3760_v0  ;;  %1445 = vrot.lane.b32.xlu0 %v3912_v13, %s3226_s8 }
 0x215   : > { %v1418_v31 = vpop.permute.xlu1 %1417 }
 0x216   : > { %v1547_v41 = vadd.f32 %v1511_v39, %v3788_v22  ;;  %v1512_v11 = vadd.f32 %v1418_v31, %v3766_v37  ;;  %v4032_v48 = vpack.c.bf16 %v1625_v50, %v1624_v54  ;;  %v4044_v37 = vpop.f32.mrb[73].mxu0 }
 0x218   : > { %v1590_v18 = vadd.f32 %v3934_v8, %v1547_v41  ;;  %v1548_v30 = vadd.f32 %v1512_v11, %v3794_v44  ;;  %1934 = vrot.lane.b32.xlu1 %v4032_v48, %s3226_s8  ;;  %1447 = vrot.lane.b32.xlu0 %v3922_v43, %s3226_s8  ;;  %v4046_v44 = vpop.f32.mrb[74].mxu0 }
 0x219   : > { %v4052_v26 = vpop.f32.mrb[75].mxu0 }
 0x21a   : > { %v1591_v0 = vadd.f32 %v3934_v8, %v1548_v30  ;;  %v1626_v28 = vmax.f32 %v1590_v18, 0.0 }
 0x21b   : > { %v1420_v23 = vpop.permute.xlu0 %1419 }
 0x21c   : > { %v1627_v34 = vmax.f32 %v1591_v0, 0.0  ;;  %v1513_v22 = vadd.f32 %v1420_v23, %v3772_v32  ;;  %1449 = vrot.lane.b32.xlu1 %v3926_v12, %s3226_s8  ;;  %v1683_v0 = vshll.u32 %v3969_v58, 16 }
 0x21d   : > { %v1422_v7 = vpop.permute.xlu1 %1421 }
 0x21e   : > { %v1549_v14 = vadd.f32 %v1513_v22, %v3800_v40  ;;  %v1514_v36 = vadd.f32 %v1422_v7, %v3778_v25  ;;  %v4050_v17 = vpack.c.bf16 %v1627_v34, %v1626_v28  ;;  %v1836_v23 = vrot.slane %v1683_v0, 1 }
 0x21f   : > { %v1690_v28 = vshll.u32 %v3988_v24, 16 }
 0x220   : > { %v1592_v9 = vadd.f32 %v3934_v8, %v1549_v14  ;;  %v1550_v32 = vadd.f32 %v1514_v36, %v3812_v46  ;;  %1936 = vrot.lane.b32.xlu0 %v4050_v17, %s3226_s8  ;;  %1451 = vrot.lane.b32.xlu1 %v3940_v21, %s3226_s8  ;;  %v1816_v14 = vsel %vm3524_vm6, 0, %v3971_v16 }
 0x222   : > { %v1593_v35 = vadd.f32 %v3934_v8, %v1550_v32  ;;  %v1628_v40 = vmax.f32 %v1592_v9, 0.0 }
 0x223   : > { %v1424_v27 = vpop.permute.xlu0 %1423 }
 0x224   : > { %v1629_v3 = vmax.f32 %v1593_v35, 0.0  ;;  %v1515_v25 = vadd.f32 %v1424_v27, %v3784_v42  ;;  %1453 = vrot.lane.b32.xlu0 %v3945_v57, %s3226_s8  ;;  %v1838_v35 = vrot.slane %v1690_v28, 1 }
 0x225   : > { %v1426_v38 = vpop.permute.xlu1 %1425 }
 0x226   : > { %v1551_v29 = vadd.f32 %v1515_v25, %v3827_v53  ;;  %v1516_v46 = vadd.f32 %v1426_v38, %v3790_v63  ;;  %v4066_v61 = vpack.c.bf16 %v1629_v3, %v1628_v40  ;;  %v4789_v63 = vld [vmem:[#allocation8_spill] sm:$0xff]  ;;  %v1687_v40 = vshrl.u32 %v3988_v24, 16  ;;  %v4791_v3 = vld [vmem:[#allocation6_spill] sm:$0xff] }
 0x227   : > { %v1697_v38 = vshll.u32 %v4002_v55, 16 }
 0x228   : > { %v1594_v20 = vadd.f32 %v3934_v8, %v1551_v29  ;;  %v1552_v15 = vadd.f32 %v1516_v46, %v3837_v60  ;;  %1938 = vrot.lane.b32.xlu1 %v4066_v61, %s3226_s8  ;;  %1455 = vrot.lane.b32.xlu0 %v3954_v52, %s3226_s8  ;;  %v1348_v60 = vpop.f32.mrb[76].mxu0  ;;  %v1839_v16 = vor.u32 %v1838_v35, %v1687_v40 }
 0x229   : > { %v4083_v11 = vpop.f32.mrb[77].mxu0 }
 0x22a   : > { %v1595_v42 = vadd.f32 %v3934_v8, %v1552_v15  ;;  %v1630_v50 = vmax.f32 %v1594_v20, 0.0  ;;  %v1351_v18 = vpop.f32.mrb[78].mxu0  ;;  %v4792_v20 = vld [vmem:[#allocation9_spill] sm:$0xff] }
 0x22b   : > { %v1428_v54 = vpop.permute.xlu1 %1427  ;;  %v4085_v30 = vpop.f32.mrb[79].mxu0  ;;  %v1890_v18 = vsel %vm3435_vm3, %v1839_v16, 0 }
 0x22c   : > { %v1631_v39 = vmax.f32 %v1595_v42, 0.0  ;;  %v1517_v53 = vadd.f32 %v1428_v54, %v3796_v45  ;;  %1457 = vrot.lane.b32.xlu1 %v3960_v33, %s3226_s8  ;;  %v1680_v45 = vshrl.u32 %v3969_v58, 16 }
 0x22e   : > { %v1553_v31 = vadd.f32 %v1517_v53, %v4789_v63  ;;  %v4079_v41 = vpack.c.bf16 %v1631_v39, %v1630_v50  ;;  %v1837_v34 = vor.u32 %v1836_v23, %v1680_v45  ;;  %v1682_v36 = vrot.slane %v1680_v45, 7  ;;  %v4793_v53 = vld [vmem:[#allocation7_spill] sm:$0xff]  ;;  %v4794_v45 = vld [vmem:[#allocation10_spill] sm:$0xff] }
 0x22f   : > { %v1689_v50 = vrot.slane %v1687_v40, 7 }
 0x230   : > { %1940 = vrot.lane.b32.xlu0 %v4079_v41, %s3226_s8  ;;  %v1889_v32 = vsel %vm3435_vm3, %v1837_v34, 0  ;;  %v1685_v58 = vor.u32 %v1683_v0, %v1682_v36  ;;  %v1596_v46 = vadd.f32 %v3934_v8, %v1553_v31  ;;  %v1840_v0 = vrot.slane %v1697_v38, 1 }
 0x231   : > { %v1694_v36 = vshrl.u32 %v4002_v55, 16 }
 0x232   : > { %v1817_v54 = vsel %vm3524_vm6, 0, %v1685_v58  ;;  %v1632_v31 = vmax.f32 %v1596_v46, 0.0  ;;  %v1704_v58 = vshll.u32 %v4016_v51, 16 }
 0x264   : > { %v1925_v22 = vpop.permute.xlu0 %1924 }
 0x265   : > { %v1962_v9 = vsel %vm843_vm2, %v1816_v14, %v1925_v22  ;;  %v1692_v14 = vor.u32 %v1690_v28, %v1689_v50  ;;  %v1696_v28 = vrot.slane %v1694_v36, 7 }
 0x266   : > { %2263 = vmatmul.mubr.bf16.vlgmr.msra.gmra.mrb[0].mxu1 %v1962_v9 }
 0x267   : > { %2955 = vmatprep.mubr.msk.bf16.mxu1 %vm843_vm2, %v1889_v32  ;;  %v4795_v32 = vld [vmem:[#allocation11_spill] sm:$0xff]  ;;  %v1818_v55 = vsel %vm3524_vm6, 0, %v1692_v14 }
 0x268   : > { %v1430_v27 = vpop.permute.xlu0 %1429 }
 0x269   : > { %v1518_v25 = vadd.f32 %v1430_v27, %v4791_v3 }
 0x26a   : > { %v1927_v29 = vpop.permute.xlu1 %1926 }
 0x26b   : > { %v1554_v15 = vadd.f32 %v1518_v25, %v4792_v20  ;;  %v1966_v24 = vsel %vm843_vm2, %v1817_v54, %v1927_v29  ;;  %v1841_v25 = vor.u32 %v1840_v0, %v1694_v36  ;;  %v1701_v0 = vshrl.u32 %v4016_v51, 16 }
 0x26c   : > { %v1432_v42 = vpop.permute.xlu0 %1431 }
 0x26d   : > { %v1597_v39 = vadd.f32 %v3934_v8, %v1554_v15  ;;  %v1519_v63 = vadd.f32 %v1432_v42, %v4793_v53  ;;  %v4796_v15 = vld [vmem:[#allocation12_spill] sm:$0xff]  ;;  %v1842_v53 = vrot.slane %v1704_v58, 1 }
 0x26e   : > { %2271 = vmatmul.mubr.bf16.gmra.mrb[4].mxu1 %v1966_v24  ;;  %v1434_v60 = vpop.permute.xlu1 %1433 }
 0x26f   : > { %v1633_v23 = vmax.f32 %v1597_v39, 0.0  ;;  %v1555_v34 = vadd.f32 %v1519_v63, %v4794_v45  ;;  %v1520_v22 = vadd.f32 %v1434_v60, %v3832_v5  ;;  %2956 = vmatprep.mubr.msk.bf16.mxu1 %vm843_vm2, %v1890_v18  ;;  %v1699_v18 = vor.u32 %v1697_v38, %v1696_v28  ;;  %v4797_v45 = vld [vmem:[#allocation13_spill] sm:$0xff] }
 0x270   : > { %v1843_v36 = vor.u32 %v1842_v53, %v1701_v0 }
 0x271   : > { %v1598_v9 = vadd.f32 %v3934_v8, %v1555_v34  ;;  %v1556_v35 = vadd.f32 %v1520_v22, %v4795_v32  ;;  %v4115_v27 = vpack.c.bf16 %v1633_v23, %v1632_v31  ;;  %v1703_v32 = vrot.slane %v1701_v0, 7 }
 0x272   : > { %v1929_v40 = vpop.permute.xlu0 %1928  ;;  %v1436_v3 = vpop.permute.xlu1 %1435 }
 0x273   : > { %v1599_v29 = vadd.f32 %v3934_v8, %v1556_v35  ;;  %v1521_v5 = vadd.f32 %v1436_v3, %v3845_v62  ;;  %1942 = vrot.lane.b32.xlu1 %v4115_v27, %s3226_s8  ;;  %v1736_v16 = vshrl.u32 %v4115_v27, 16  ;;  %v1634_v46 = vmax.f32 %v1598_v9, 0.0  ;;  %v4798_v3 = vld [vmem:[#allocation14_spill] sm:$0xff] }
 0x274   : > { %v1970_v54 = vsel %vm843_vm2, %v1818_v55, %v1929_v40  ;;  %v1739_v50 = vshll.u32 %v4115_v27, 16  ;;  %v1891_v62 = vsel %vm3435_vm3, %v1841_v25, 0  ;;  %v1819_v9 = vsel %vm3524_vm6, 0, %v1699_v18 }
 0x275   : > { %v1635_v20 = vmax.f32 %v1599_v29, 0.0  ;;  %v1557_v42 = vadd.f32 %v1521_v5, %v4796_v15  ;;  %v1738_v63 = vrot.slane %v1736_v16, 7  ;;  %v1892_v55 = vsel %vm3435_vm3, %v1843_v36, 0 }
 0x276   : > { %2279 = vmatmul.mubr.bf16.gmra.mrb[8].mxu1 %v1970_v54  ;;  %v1438_v39 = vpop.permute.xlu0 %1437  ;;  %v1708_v15 = vshrl.u32 %v4032_v48, 16  ;;  %v4799_v54 = vld [vmem:[#allocation15_spill] sm:$0xff] }
 0x277   : > { %v1522_v24 = vadd.f32 %v1438_v39, %v3852_v2  ;;  %2957 = vmatprep.mubr.msk.bf16.mxu1 %vm843_vm2, %v1891_v62  ;;  %v4134_v60 = vpack.c.bf16 %v1635_v20, %v1634_v46  ;;  %v4139_v31 = vor.u32 %v1739_v50, %v1738_v63  ;;  %v1600_v23 = vadd.f32 %v3934_v8, %v1557_v42 }
 0x278   : > { %v1711_v2 = vshll.u32 %v4032_v48, 16  ;;  %v1706_v20 = vor.u32 %v1704_v58, %v1703_v32  ;;  %v1718_v62 = vshll.u32 %v4050_v17, 16  ;;  %v1710_v48 = vrot.slane %v1708_v15, 7 }
 0x279   : > { %v1558_v34 = vadd.f32 %v1522_v24, %v4797_v45  ;;  %1944 = vrot.lane.b32.xlu0 %v4134_v60, %s3226_s8  ;;  %v1636_v35 = vmax.f32 %v1600_v23, 0.0  ;;  %v4800_v45 = vld [vmem:[#allocation16_spill] sm:$0xff]  ;;  %v1715_v32 = vshrl.u32 %v4050_v17, 16  ;;  %v1746_v27 = vshll.u32 %v4134_v60, 16 }
 0x27a   : > { %v1931_v22 = vpop.permute.xlu1 %1930  ;;  %v1440_v14 = vpop.permute.xlu0 %1439  ;;  %v1844_v28 = vrot.slane %v1711_v2, 1  ;;  %v1820_v58 = vsel %vm3524_vm6, 0, %v1706_v20 }
 0x27b   : > { %v1601_v38 = vadd.f32 %v3934_v8, %v1558_v34  ;;  %v1523_v51 = vadd.f32 %v1440_v14, %v3865_v6  ;;  %v1974_v29 = vsel %vm843_vm2, %v1819_v9, %v1931_v22  ;;  %v1713_v9 = vor.u32 %v1711_v2, %v1710_v48 }
 0x27c   : > { %v1845_v24 = vor.u32 %v1844_v28, %v1708_v15  ;;  %v1717_v17 = vrot.slane %v1715_v32, 7  ;;  %v4802_v15 = vld [vmem:[#allocation18_spill] sm:$0xff] }
 0x27d   : > { %v1637_v40 = vmax.f32 %v1601_v38, 0.0  ;;  %v1559_v25 = vadd.f32 %v1523_v51, %v4798_v3  ;;  %v1846_v38 = vrot.slane %v1718_v62, 1  ;;  %v1821_v2 = vsel %vm3524_vm6, 0, %v1713_v9 }
 0x27e   : > { %2289 = vmatmul.mubr.bf16.gmra.mrb[12].mxu1 %v1974_v29  ;;  %v1442_v5 = vpop.permute.xlu1 %1441  ;;  %v1893_v36 = vsel %vm3435_vm3, %v1845_v24, 0 }
 0x27f   : > { %v1524_v46 = vadd.f32 %v1442_v5, %v3872_v10  ;;  %2958 = vmatprep.mubr.msk.bf16.mxu1 %vm843_vm2, %v1892_v55  ;;  %v4156_v6 = vpack.c.bf16 %v1637_v40, %v1636_v35  ;;  %v1602_v42 = vadd.f32 %v3934_v8, %v1559_v25  ;;  %v4801_v40 = vld [vmem:[#allocation17_spill] sm:$0xff]  ;;  %v1725_v25 = vshll.u32 %v4066_v61, 16 }
 0x280   : > { %v1847_v55 = vor.u32 %v1846_v38, %v1715_v32 }
 0x281   : > { %v1560_v39 = vadd.f32 %v1524_v46, %v4799_v54  ;;  %1946 = vrot.lane.b32.xlu1 %v4156_v6, %s3226_s8  ;;  %v1638_v0 = vmax.f32 %v1602_v42, 0.0 }
 0x282   : > { %v1933_v53 = vpop.permute.xlu0 %1932  ;;  %v1444_v63 = vpop.permute.xlu1 %1443 }
 0x283   : > { %v1603_v10 = vadd.f32 %v3934_v8, %v1560_v39  ;;  %v1525_v18 = vadd.f32 %v1444_v63, %v3885_v49  ;;  %v1978_v22 = vsel %vm843_vm2, %v1820_v58, %v1933_v53  ;;  %v1894_v53 = vsel %vm3435_vm3, %v1847_v55, 0 }
 0x284   : > { %v1848_v63 = vrot.slane %v1725_v25, 1 }
 0x285   : > { %v1639_v23 = vmax.f32 %v1603_v10, 0.0  ;;  %v1561_v34 = vadd.f32 %v1525_v18, %v4800_v45  ;;  %v1720_v10 = vor.u32 %v1718_v62, %v1717_v17  ;;  %v1722_v18 = vshrl.u32 %v4066_v61, 16 }
 0x286   : > { %2299 = vmatmul.mubr.bf16.gmra.mrb[16].mxu1 %v1978_v22  ;;  %v1446_v14 = vpop.permute.xlu0 %1445 }
 0x287   : > { %v1526_v51 = vadd.f32 %v1446_v14, %v3892_v59  ;;  %2959 = vmatprep.mubr.msk.bf16.mxu1 %vm843_vm2, %v1893_v36  ;;  %v4174_v49 = vpack.c.bf16 %v1639_v23, %v1638_v0  ;;  %v1604_v35 = vadd.f32 %v3934_v8, %v1561_v34  ;;  %v1732_v0 = vshll.u32 %v4079_v41, 16 }
 0x288   : > { %v1849_v34 = vor.u32 %v1848_v63, %v1722_v18  ;;  %v1822_v62 = vsel %vm3524_vm6, 0, %v1720_v10  ;;  %v1724_v61 = vrot.slane %v1722_v18, 7 }
 0x289   : > { %v1562_v3 = vadd.f32 %v1526_v51, %v4801_v40  ;;  %1948 = vrot.lane.b32.xlu0 %v4174_v49, %s3226_s8  ;;  %v1640_v46 = vmax.f32 %v1604_v35, 0.0  ;;  %v1850_v32 = vrot.slane %v1732_v0, 1 }
 0x28a   : > { %v1935_v29 = vpop.permute.xlu1 %1934  ;;  %v1448_v5 = vpop.permute.xlu0 %1447  ;;  %v1895_v9 = vsel %vm3435_vm3, %v1849_v34, 0  ;;  %v1727_v40 = vor.u32 %v1725_v25, %v1724_v61 }
 0x28b   : > { %v1605_v59 = vadd.f32 %v3934_v8, %v1562_v3  ;;  %v1527_v28 = vadd.f32 %v1448_v5, %v3905_v4  ;;  %v1982_v54 = vsel %vm843_vm2, %v1821_v2, %v1935_v29 }
 0x28c   : > { %v1823_v2 = vsel %vm3524_vm6, 0, %v1727_v40 }
 0x28d   : > { %v1641_v20 = vmax.f32 %v1605_v59, 0.0  ;;  %v1563_v42 = vadd.f32 %v1527_v28, %v4802_v15 }
 0x28e   : > { %2309 = vmatmul.mubr.bf16.gmra.mrb[20].mxu1 %v1982_v54  ;;  %v1450_v39 = vpop.permute.xlu1 %1449 }
 0x28f   : > { %v1528_v24 = vadd.f32 %v1450_v39, %v3912_v13  ;;  %2960 = vmatprep.mubr.msk.bf16.mxu1 %vm843_vm2, %v1894_v53  ;;  %v4192_v4 = vpack.c.bf16 %v1641_v20, %v1640_v46  ;;  %v1606_v58 = vadd.f32 %v3934_v8, %v1563_v42 }
 0x291   : > { %v1564_v48 = vadd.f32 %v1528_v24, %v3947_v47  ;;  %1950 = vrot.lane.b32.xlu1 %v4192_v4, %s3226_s8  ;;  %v1642_v14 = vmax.f32 %v1606_v58, 0.0 }
 0x292   : > { %v1937_v23 = vpop.permute.xlu0 %1936  ;;  %v1452_v45 = vpop.permute.xlu1 %1451 }
 0x293   : > { %v1607_v13 = vadd.f32 %v3934_v8, %v1564_v48  ;;  %v1529_v22 = vadd.f32 %v1452_v45, %v3922_v43  ;;  %v1986_v38 = vsel %vm843_vm2, %v1822_v62, %v1937_v23  ;;  %v1753_v23 = vshll.u32 %v4156_v6, 16 }
 0x295   : > { %v1643_v36 = vmax.f32 %v1607_v13, 0.0  ;;  %v1565_v47 = vadd.f32 %v1529_v22, %v3956_v1  ;;  %1459 = vrot.lane.b32.xlu1 %v4028_v19, %s3226_s8  ;;  %v1729_v1 = vshrl.u32 %v4079_v41, 16  ;;  %v4803_v19 = vld [vmem:[#allocation19_spill] sm:$0xff]  ;;  %v1825_v13 = vsel %vm3524_vm6, 0, %v4139_v31 }
 0x296   : > { %2319 = vmatmul.mubr.bf16.gmra.mrb[24].mxu1 %v1986_v38  ;;  %v1454_v51 = vpop.permute.xlu0 %1453 }
 0x297   : > { %v1530_v43 = vadd.f32 %v1454_v51, %v3926_v12  ;;  %2961 = vmatprep.mubr.msk.bf16.mxu1 %vm843_vm2, %v1895_v9  ;;  %v4212_v35 = vpack.c.bf16 %v1643_v36, %v1642_v14  ;;  %v1608_v3 = vadd.f32 %v3934_v8, %v1565_v47  ;;  %v1851_v59 = vor.u32 %v1850_v32, %v1729_v1 }
 0x298   : > { %v1731_v25 = vrot.slane %v1729_v1, 7  ;;  %v1856_v14 = vrot.slane %v1753_v23, 1  ;;  %v1760_v47 = vshll.u32 %v4174_v49, 16 }
 0x299   : > { %v1566_v29 = vadd.f32 %v1530_v43, %v4803_v19  ;;  %1952 = vrot.lane.b32.xlu0 %v4212_v35, %s3226_s8  ;;  %v1644_v17 = vmax.f32 %v1608_v3, 0.0  ;;  %v1896_v42 = vsel %vm3435_vm3, %v1851_v59, 0  ;;  %v1767_v3 = vshll.u32 %v4192_v4, 16 }
 0x29a   : > { %v1939_v5 = vpop.permute.xlu1 %1938  ;;  %v1456_v55 = vpop.permute.xlu0 %1455  ;;  %v1858_v40 = vrot.slane %v1760_v47, 1 }
 0x29b   : > { %v1609_v28 = vadd.f32 %v3934_v8, %v1566_v29  ;;  %v1531_v12 = vadd.f32 %v1456_v55, %v3940_v21  ;;  %v1990_v20 = vsel %vm843_vm2, %v1823_v2, %v1939_v5  ;;  %v1852_v21 = vrot.slane %v1739_v50, 1 }
 0x29d   : > { %v1645_v41 = vmax.f32 %v1609_v28, 0.0  ;;  %v1567_v46 = vadd.f32 %v1531_v12, %v4044_v37  ;;  %1461 = vrot.lane.b32.xlu0 %v4046_v44, %s3226_s8  ;;  %v1734_v37 = vor.u32 %v1732_v0, %v1731_v25  ;;  %v1853_v24 = vor.u32 %v1852_v21, %v1736_v16 }
 0x29e   : > { %2329 = vmatmul.mubr.bf16.gmra.mrb[28].mxu1 %v1990_v20  ;;  %v1458_v15 = vpop.permute.xlu1 %1457  ;;  %v1854_v16 = vrot.slane %v1746_v27, 1  ;;  %v1743_v0 = vshrl.u32 %v4134_v60, 16  ;;  %v1750_v60 = vshrl.u32 %v4156_v6, 16  ;;  %v1757_v6 = vshrl.u32 %v4174_v49, 16 }
 0x29f   : > { %v1532_v54 = vadd.f32 %v1458_v15, %v3945_v57  ;;  %2962 = vmatprep.mubr.msk.bf16.mxu1 %vm843_vm2, %v1896_v42  ;;  %v4233_v39 = vpack.c.bf16 %v1645_v41, %v1644_v17  ;;  %v1610_v53 = vadd.f32 %v3934_v8, %v1567_v46  ;;  %v1824_v57 = vsel %vm3524_vm6, 0, %v1734_v37 }
 0x2a0   : > { %v1855_v45 = vor.u32 %v1854_v16, %v1743_v0  ;;  %v1745_v22 = vrot.slane %v1743_v0, 7  ;;  %v1857_v51 = vor.u32 %v1856_v14, %v1750_v60  ;;  %v1752_v9 = vrot.slane %v1750_v60, 7 }
 0x2a1   : > { %v1568_v44 = vadd.f32 %v1532_v54, %v4052_v26  ;;  %1954 = vrot.lane.b32.xlu1 %v4233_v39, %s3226_s8  ;;  %v1646_v10 = vmax.f32 %v1610_v53, 0.0  ;;  %v1897_v26 = vsel %vm3435_vm3, %v1853_v24, 0  ;;  %v1859_v29 = vor.u32 %v1858_v40, %v1757_v6 }
 0x2a2   : > { %v1941_v63 = vpop.permute.xlu0 %1940  ;;  %v1898_v61 = vsel %vm3435_vm3, %v1855_v45, 0  ;;  %v1748_v36 = vor.u32 %v1746_v27, %v1745_v22  ;;  %v1899_v43 = vsel %vm3435_vm3, %v1857_v51, 0  ;;  %v1755_v1 = vor.u32 %v1753_v23, %v1752_v9 }
 0x2a3   : > { %v1611_v50 = vadd.f32 %v3934_v8, %v1568_v44  ;;  %v1994_v58 = vsel %vm843_vm2, %v1824_v57, %v1941_v63  ;;  %v1759_v55 = vrot.slane %v1757_v6, 7  ;;  %v1900_v28 = vsel %vm3435_vm3, %v1859_v29, 0 }
 0x2a4   : > { %v1826_v31 = vsel %vm3524_vm6, 0, %v1748_v36  ;;  %v1827_v5 = vsel %vm3524_vm6, 0, %v1755_v1  ;;  %v1860_v12 = vrot.slane %v1767_v3, 1  ;;  %v1764_v49 = vshrl.u32 %v4192_v4, 16 }
 0x2a5   : > { %v1647_v18 = vmax.f32 %v1611_v50, 0.0  ;;  %v1762_v2 = vor.u32 %v1760_v47, %v1759_v55  ;;  %v1774_v25 = vshll.u32 %v4212_v35, 16  ;;  %v1771_v4 = vshrl.u32 %v4212_v35, 16 }
 0x2a6   : > { %2339 = vmatmul.mubr.bf16.gmra.mrb[32].mxu1 %v1994_v58  ;;  %v1861_v41 = vor.u32 %v1860_v12, %v1764_v49  ;;  %v1766_v20 = vrot.slane %v1764_v49, 7  ;;  %v1781_v37 = vshll.u32 %v4233_v39, 16 }
 0x2a7   : > { %2963 = vmatprep.mubr.msk.bf16.mxu1 %vm843_vm2, %v1897_v26  ;;  %v4248_v48 = vpack.c.bf16 %v1647_v18, %v1646_v10  ;;  %v1828_v46 = vsel %vm3524_vm6, 0, %v1762_v2  ;;  %v1862_v21 = vrot.slane %v1774_v25, 1  ;;  %v1773_v24 = vrot.slane %v1771_v4, 7 }
 0x2a8   : > { %v1901_v42 = vsel %vm3435_vm3, %v1861_v41, 0  ;;  %v1769_v54 = vor.u32 %v1767_v3, %v1766_v20  ;;  %v1864_v18 = vrot.slane %v1781_v37, 1  ;;  %v1778_v26 = vshrl.u32 %v4233_v39, 16 }
 0x2a9   : > { %1956 = vrot.lane.b32.xlu0 %v4248_v48, %s3226_s8  ;;  %v1863_v44 = vor.u32 %v1862_v21, %v1771_v4  ;;  %v1776_v35 = vor.u32 %v1774_v25, %v1773_v24  ;;  %v1788_v16 = vshll.u32 %v4248_v48, 16  ;;  %v1785_v14 = vshrl.u32 %v4248_v48, 16 }
 0x2aa   : > { %v1829_v63 = vsel %vm3524_vm6, 0, %v1769_v54  ;;  %v1865_v23 = vor.u32 %v1864_v18, %v1778_v26 }
 0x2ab   : > { %v1902_v10 = vsel %vm3435_vm3, %v1863_v44, 0  ;;  %v1830_v45 = vsel %vm3524_vm6, 0, %v1776_v35  ;;  %v1787_v9 = vrot.slane %v1785_v14, 7 }
 0x2e5   : > { %v1943_v34 = vpop.permute.xlu1 %1942 }
 0x2e6   : > { %v1998_v62 = vsel %vm843_vm2, %v1825_v13, %v1943_v34  ;;  %v1780_v34 = vrot.slane %v1778_v26, 7 }
 0x2e7   : > { %2349 = vmatmul.mubr.bf16.gmra.mrb[36].mxu1 %v1998_v62  ;;  %v1866_v62 = vrot.slane %v1788_v16, 1 }
 0x2e8   : > { %2964 = vmatprep.mubr.msk.bf16.mxu1 %vm843_vm2, %v1898_v61  ;;  %v1783_v61 = vor.u32 %v1781_v37, %v1780_v34 }
 0x2e9   : > { %v1867_v47 = vor.u32 %v1866_v62, %v1785_v14 }
 0x2eb   : > { %v1945_v38 = vpop.permute.xlu0 %1944 }
 0x2ec   : > { %v2002_v32 = vsel %vm843_vm2, %v1826_v31, %v1945_v38  ;;  %v1831_v31 = vsel %vm3524_vm6, 0, %v1783_v61 }
 0x2ef   : > { %2359 = vmatmul.mubr.bf16.gmra.mrb[40].mxu1 %v2002_v32 }
 0x2f0   : > { %2965 = vmatprep.mubr.msk.bf16.mxu1 %vm843_vm2, %v1899_v43 }
 0x2f3   : > { %v1947_v19 = vpop.permute.xlu1 %1946 }
 0x2f4   : > { %v2006_v59 = vsel %vm843_vm2, %v1827_v5, %v1947_v19 }
 0x2f7   : > { %2369 = vmatmul.mubr.bf16.gmra.mrb[44].mxu1 %v2006_v59 }
 0x2f8   : > { %2966 = vmatprep.mubr.msk.bf16.mxu1 %vm843_vm2, %v1900_v28 }
 0x2fb   : > { %v1949_v17 = vpop.permute.xlu0 %1948 }
 0x2fc   : > { %v2010_v15 = vsel %vm843_vm2, %v1828_v46, %v1949_v17 }
 0x2ff   : > { %2379 = vmatmul.mubr.bf16.gmra.mrb[48].mxu1 %v2010_v15 }
 0x300   : > { %2967 = vmatprep.mubr.msk.bf16.mxu1 %vm843_vm2, %v1901_v42 }
 0x303   : > { %v1951_v53 = vpop.permute.xlu1 %1950 }
 0x304   : > { %v2014_v50 = vsel %vm843_vm2, %v1829_v63, %v1951_v53 }
 0x307   : > { %2389 = vmatmul.mubr.bf16.gmra.mrb[52].mxu1 %v2014_v50  ;;  %v1460_v57 = vpop.permute.xlu1 %1459 }
 0x308   : > { %v1533_v58 = vadd.f32 %v1460_v57, %v3954_v52  ;;  %2968 = vmatprep.mubr.msk.bf16.mxu1 %vm843_vm2, %v1902_v10  ;;  %v1903_v52 = vsel %vm3435_vm3, %v1865_v23, 0 }
 0x30a   : > { %v1569_v27 = vadd.f32 %v1533_v58, %v4083_v11 }
 0x30b   : > { %v1953_v0 = vpop.permute.xlu0 %1952 }
 0x30c   : > { %v2018_v13 = vsel %vm843_vm2, %v1830_v45, %v1953_v0  ;;  %v1612_v39 = vadd.f32 %v3934_v8, %v1569_v27 }
 0x30e   : > { %v1648_v38 = vmax.f32 %v1612_v39, 0.0 }
 0x30f   : > { %2399 = vmatmul.mubr.bf16.gmra.mrb[56].mxu1 %v2018_v13  ;;  %v1462_v22 = vpop.permute.xlu0 %1461 }
 0x310   : > { %v1534_v11 = vadd.f32 %v1462_v22, %v3960_v33  ;;  %2969 = vmatprep.mubr.msk.bf16.mxu1 %vm843_vm2, %v1903_v52  ;;  %v1904_v33 = vsel %vm3435_vm3, %v1867_v47, 0  ;;  %v1652_v40 = vmul.f32 0.0, %v1648_v38  ;;  %v4417_v47 = vld [vmem:[%s4762_s6] ss:$0 sm:$0xff] }
 0x312   : > { %v1570_v36 = vadd.f32 %v1534_v11, %v4085_v30  ;;  %v1790_v30 = vor.u32 %v1788_v16, %v1787_v9 }
 0x313   : > { %v1955_v60 = vpop.permute.xlu1 %1954 }
 0x314   : > { %v1613_v51 = vadd.f32 %v3934_v8, %v1570_v36  ;;  %v2022_v43 = vsel %vm843_vm2, %v1831_v31, %v1955_v60  ;;  %v1832_v19 = vsel %vm3524_vm6, 0, %v1790_v30 }
 0x316   : > { %v1649_v32 = vmax.f32 %v1613_v51, 0.0 }
 0x317   : > { %2409 = vmatmul.mubr.bf16.gmra.mrb[60].mxu1 %v2022_v43  ;;  %v3114_v43 = vld [vmem:[%s3352_s20] sm:$0xff] }
 0x318   : > { %v1653_v48 = vmul.f32 0.0, %v1649_v32  ;;  %2970 = vmatprep.mubr.msk.bf16.mxu1 %vm843_vm2, %v1904_v33 }
 0x31a   : > { %v1671_v1 = vpack.c.bf16 %v1653_v48, %v1652_v40 }
 0x31b   : > { %v1957_v6 = vpop.permute.xlu0 %1956 }
 0x31c   : > { %1958 = vrot.lane.b32.xlu1 %v1671_v1, %s3226_s8  ;;  %v1795_v8 = vshll.u32 %v1671_v1, 16  ;;  %v1792_v3 = vshrl.u32 %v1671_v1, 16  ;;  %v2026_v29 = vsel %vm843_vm2, %v1832_v19, %v1957_v6  ;;  %v3115_v6 = vld [vmem:[%s3352_s20 + $0x8] sm:$0xff] }
 0x31e   : > { %v1868_v5 = vrot.slane %v1795_v8, 1  ;;  %v1794_v55 = vrot.slane %v1792_v3, 7 }
 0x31f   : > { %2419 = vmatmul.mubr.bf16.gmra.mrb[64].mxu1 %v2026_v29 }
 0x320   : > { %v1869_v59 = vor.u32 %v1868_v5, %v1792_v3  ;;  %v1797_v28 = vor.u32 %v1795_v8, %v1794_v55 }
 0x322   : > { %v1905_v12 = vsel %vm3435_vm3, %v1869_v59, 0  ;;  %v1833_v61 = vsel %vm3524_vm6, 0, %v1797_v28 }
 0x323   : > { %2971 = vmatprep.mubr.msk.bf16.mxu1 %vm843_vm2, %v1905_v12 }
 0x339   : > { %v2264_v2 = vpop.f32.mrb[0].mxu1 }
 0x33a   : > { %v2266_v49 = vpop.f32.mrb[1].mxu1 }
 0x33b   : > { %v2267_v25 = vpop.f32.mrb[2].mxu1 }
 0x33c   : > { %v2269_v17 = vpop.f32.mrb[3].mxu1 }
 0x341   : > { %v4322_v41 = vpop.f32.mrb[4].mxu1 }
 0x342   : > { %v2274_v46 = vpop.f32.mrb[5].mxu1  ;;  %2469 = vrot.lane.b32.xlu0 %v4322_v41, %s3226_s8 }
 0x343   : > { %v4326_v20 = vpop.f32.mrb[6].mxu1 }
 0x344   : > { %v2277_v15 = vpop.f32.mrb[7].mxu1  ;;  %2471 = vrot.lane.b32.xlu1 %v4326_v20, %s3226_s8 }
 0x349   : > { %v4330_v56 = vpop.f32.mrb[8].mxu1 }
 0x34a   : > { %v2282_v42 = vpop.f32.mrb[9].mxu1  ;;  %2473 = vrot.lane.b32.xlu0 %v4330_v56, %s3226_s8 }
 0x34b   : > { %v4334_v21 = vpop.f32.mrb[10].mxu1 }
 0x34c   : > { %v2286_v54 = vpop.f32.mrb[11].mxu1  ;;  %2475 = vrot.lane.b32.xlu1 %v4334_v21, %s3226_s8 }
 0x351   : > { %v4338_v4 = vpop.f32.mrb[12].mxu1 }
 0x352   : > { %v4340_v37 = vpop.f32.mrb[13].mxu1  ;;  %2477 = vrot.lane.b32.xlu0 %v4338_v4, %s3226_s8 }
 0x353   : > { %v4344_v53 = vpop.f32.mrb[14].mxu1 }
 0x354   : > { %v4346_v44 = vpop.f32.mrb[15].mxu1  ;;  %2479 = vrot.lane.b32.xlu1 %v4344_v53, %s3226_s8 }
 0x359   : > { %v4350_v63 = vpop.f32.mrb[16].mxu1 }
 0x35a   : > { %v4352_v24 = vpop.f32.mrb[17].mxu1  ;;  %2481 = vrot.lane.b32.xlu0 %v4350_v63, %s3226_s8 }
 0x35b   : > { %v4356_v50 = vpop.f32.mrb[18].mxu1 }
 0x35c   : > { %v4358_v57 = vpop.f32.mrb[19].mxu1  ;;  %2483 = vrot.lane.b32.xlu1 %v4356_v50, %s3226_s8 }
 0x361   : > { %v4362_v10 = vpop.f32.mrb[20].mxu1 }
 0x362   : > { %v4364_v18 = vpop.f32.mrb[21].mxu1  ;;  %2485 = vrot.lane.b32.xlu0 %v4362_v10, %s3226_s8 }
 0x363   : > { %v4368_v58 = vpop.f32.mrb[22].mxu1 }
 0x364   : > { %v4370_v35 = vpop.f32.mrb[23].mxu1  ;;  %2487 = vrot.lane.b32.xlu1 %v4368_v58, %s3226_s8 }
 0x369   : > { %v4374_v26 = vpop.f32.mrb[24].mxu1 }
 0x36a   : > { %v4376_v27 = vpop.f32.mrb[25].mxu1  ;;  %2489 = vrot.lane.b32.xlu0 %v4374_v26, %s3226_s8 }
 0x36b   : > { %v4380_v16 = vpop.f32.mrb[26].mxu1 }
 0x36c   : > { %v4382_v0 = vpop.f32.mrb[27].mxu1  ;;  %2491 = vrot.lane.b32.xlu1 %v4380_v16, %s3226_s8 }
 0x371   : > { %v4386_v23 = vpop.f32.mrb[28].mxu1 }
 0x372   : > { %v4388_v45 = vpop.f32.mrb[29].mxu1  ;;  %2493 = vrot.lane.b32.xlu0 %v4386_v23, %s3226_s8 }
 0x373   : > { %v4392_v34 = vpop.f32.mrb[30].mxu1 }
 0x374   : > { %v4394_v13 = vpop.f32.mrb[31].mxu1  ;;  %2495 = vrot.lane.b32.xlu1 %v4392_v34, %s3226_s8 }
 0x379   : > { %v4398_v22 = vpop.f32.mrb[32].mxu1 }
 0x37a   : > { %v4400_v52 = vpop.f32.mrb[33].mxu1  ;;  %2497 = vrot.lane.b32.xlu0 %v4398_v22, %s3226_s8 }
 0x37b   : > { %v4404_v62 = vpop.f32.mrb[34].mxu1 }
 0x37c   : > { %v4406_v39 = vpop.f32.mrb[35].mxu1  ;;  %2499 = vrot.lane.b32.xlu1 %v4404_v62, %s3226_s8 }
 0x38e   : > { %v1959_v11 = vpop.permute.xlu1 %1958 }
 0x38f   : > { %v2030_v14 = vsel %vm843_vm2, %v1833_v61, %v1959_v11 }
 0x390   : > { %2429 = vmatmul.mubr.bf16.gmra.mrb[68].mxu1 %v2030_v14 }
 0x3b4   : > { %v2470_v36 = vpop.permute.xlu0 %2469 }
 0x3b5   : > { %v2565_v60 = vadd.f32 %v2470_v36, %v2264_v2  ;;  %v3116_v2 = vld [vmem:[%s3352_s20 + $0x10] sm:$0xff]  ;;  %v3118_v36 = vld [vmem:[%s3352_s20 + $0x20] sm:$0xff] }
 0x3b6   : > { %v2472_v38 = vpop.permute.xlu1 %2471 }
 0x3b7   : > { %v2597_v51 = vadd.f32 %v2565_v60, %v2282_v42  ;;  %v2566_v31 = vadd.f32 %v2472_v38, %v2267_v25 }
 0x3b9   : > { %v2636_v7 = vadd.f32 %v4417_v47, %v2597_v51  ;;  %v2598_v9 = vadd.f32 %v2566_v31, %v2286_v54  ;;  %v3119_v31 = vld [vmem:[%s3352_s20 + $0x28] sm:$0xff] }
 0x3ba   : > { %v4422_v32 = vpop.f32.mrb[36].mxu1 }
 0x3bb   : > { %v2668_v33 = vadd.f32 %v3114_v43, %v2636_v7  ;;  %v2637_v40 = vadd.f32 %v4417_v47, %v2598_v9  ;;  %v4426_v48 = vpop.f32.mrb[37].mxu1  ;;  %2501 = vrot.lane.b32.xlu0 %v4422_v32, %s3226_s8 }
 0x3bc   : > { %v4430_v30 = vpop.f32.mrb[38].mxu1  ;;  %v2474_v1 = vpop.permute.xlu0 %2473 }
 0x3bd   : > { %2700 = vst.msk [vmem:[%s4432_s22] sm:$0xff] %vm843_vm2, %v2668_v33  ;;  %v2669_v8 = vadd.f32 %v3115_v6, %v2637_v40  ;;  %v2567_v3 = vadd.f32 %v2474_v1, %v4322_v41  ;;  %v4438_v19 = vpop.f32.mrb[39].mxu1  ;;  %2503 = vrot.lane.b32.xlu1 %v4430_v30, %s3226_s8 }
 0x3be   : > { %v2476_v29 = vpop.permute.xlu1 %2475 }
 0x3bf   : > { %2701 = vst.msk [vmem:[%s4432_s22 + $0x8] sm:$0xff] %vm843_vm2, %v2669_v8  ;;  %v2599_v5 = vadd.f32 %v2567_v3, %v4340_v37  ;;  %v2568_v55 = vadd.f32 %v2476_v29, %v4326_v20  ;;  %v3117_v20 = vld [vmem:[%s3352_s20 + $0x18] sm:$0xff]  ;;  %v3120_v8 = vld [vmem:[%s3352_s20 + $0x30] sm:$0xff] }
 0x3c1   : > { %v2638_v59 = vadd.f32 %v4417_v47, %v2599_v5  ;;  %v2600_v28 = vadd.f32 %v2568_v55, %v4346_v44  ;;  %v3121_v55 = vld [vmem:[%s3352_s20 + $0x38] sm:$0xff] }
 0x3c2   : > { %v4448_v12 = vpop.f32.mrb[40].mxu1 }
 0x3c3   : > { %v2670_v49 = vadd.f32 %v3116_v2, %v2638_v59  ;;  %v2639_v25 = vadd.f32 %v4417_v47, %v2600_v28  ;;  %v4452_v17 = vpop.f32.mrb[41].mxu1  ;;  %2505 = vrot.lane.b32.xlu0 %v4448_v12, %s3226_s8 }
 0x3c4   : > { %v4456_v41 = vpop.f32.mrb[42].mxu1  ;;  %v2478_v46 = vpop.permute.xlu0 %2477 }
 0x3c5   : > { %2702 = vst.msk [vmem:[%s4432_s22 + $0x10] sm:$0xff] %vm843_vm2, %v2670_v49  ;;  %v2671_v15 = vadd.f32 %v3117_v20, %v2639_v25  ;;  %v2569_v42 = vadd.f32 %v2478_v46, %v4330_v56  ;;  %v4462_v54 = vpop.f32.mrb[43].mxu1  ;;  %2507 = vrot.lane.b32.xlu1 %v4456_v41, %s3226_s8 }
 0x3c6   : > { %v2480_v37 = vpop.permute.xlu1 %2479 }
 0x3c7   : > { %2703 = vst.msk [vmem:[%s4432_s22 + $0x18] sm:$0xff] %vm843_vm2, %v2671_v15  ;;  %v2601_v44 = vadd.f32 %v2569_v42, %v4352_v24  ;;  %v2570_v11 = vadd.f32 %v2480_v37, %v4334_v21  ;;  %v3122_v15 = vld [vmem:[%s3352_s20 + $0x40] sm:$0xff] }
 0x3c9   : > { %v2640_v61 = vadd.f32 %v4417_v47, %v2601_v44  ;;  %v2602_v14 = vadd.f32 %v2570_v11, %v4358_v57  ;;  %v3123_v11 = vld [vmem:[%s3352_s20 + $0x48] sm:$0xff] }
 0x3ca   : > { %v4472_v56 = vpop.f32.mrb[44].mxu1 }
 0x3cb   : > { %v2672_v60 = vadd.f32 %v3118_v36, %v2640_v61  ;;  %v2641_v38 = vadd.f32 %v4417_v47, %v2602_v14  ;;  %v4476_v51 = vpop.f32.mrb[45].mxu1  ;;  %2509 = vrot.lane.b32.xlu0 %v4472_v56, %s3226_s8 }
 0x3cc   : > { %v4480_v24 = vpop.f32.mrb[46].mxu1  ;;  %v2482_v21 = vpop.permute.xlu0 %2481 }
 0x3cd   : > { %2704 = vst.msk [vmem:[%s4432_s22 + $0x20] sm:$0xff] %vm843_vm2, %v2672_v60  ;;  %v2673_v57 = vadd.f32 %v3119_v31, %v2641_v38  ;;  %v2571_v7 = vadd.f32 %v2482_v21, %v4338_v4  ;;  %v4486_v9 = vpop.f32.mrb[47].mxu1  ;;  %2511 = vrot.lane.b32.xlu1 %v4480_v24, %s3226_s8 }
 0x3ce   : > { %v2484_v43 = vpop.permute.xlu1 %2483 }
 0x3cf   : > { %2705 = vst.msk [vmem:[%s4432_s22 + $0x28] sm:$0xff] %vm843_vm2, %v2673_v57  ;;  %v2603_v33 = vadd.f32 %v2571_v7, %v4364_v18  ;;  %v2572_v40 = vadd.f32 %v2484_v43, %v4344_v53  ;;  %v3124_v57 = vld [vmem:[%s3352_s20 + $0x50] sm:$0xff] }
 0x3d1   : > { %v2642_v1 = vadd.f32 %v4417_v47, %v2603_v33  ;;  %v2604_v6 = vadd.f32 %v2572_v40, %v4370_v35  ;;  %v3125_v40 = vld [vmem:[%s3352_s20 + $0x58] sm:$0xff] }
 0x3d2   : > { %v4496_v4 = vpop.f32.mrb[48].mxu1 }
 0x3d3   : > { %v2674_v3 = vadd.f32 %v3120_v8, %v2642_v1  ;;  %v2643_v29 = vadd.f32 %v4417_v47, %v2604_v6  ;;  %v4500_v5 = vpop.f32.mrb[49].mxu1  ;;  %2513 = vrot.lane.b32.xlu0 %v4496_v4, %s3226_s8 }
 0x3d4   : > { %v4504_v18 = vpop.f32.mrb[50].mxu1  ;;  %v2486_v53 = vpop.permute.xlu0 %2485 }
 0x3d5   : > { %2706 = vst.msk [vmem:[%s4432_s22 + $0x30] sm:$0xff] %vm843_vm2, %v2674_v3  ;;  %v2675_v35 = vadd.f32 %v3121_v55, %v2643_v29  ;;  %v2573_v59 = vadd.f32 %v2486_v53, %v4350_v63  ;;  %v4510_v28 = vpop.f32.mrb[51].mxu1  ;;  %2515 = vrot.lane.b32.xlu1 %v4504_v18, %s3226_s8 }
 0x3d6   : > { %v2488_v2 = vpop.permute.xlu1 %2487 }
 0x3d7   : > { %2707 = vst.msk [vmem:[%s4432_s22 + $0x38] sm:$0xff] %vm843_vm2, %v2675_v35  ;;  %v2605_v49 = vadd.f32 %v2573_v59, %v4376_v27  ;;  %v2574_v25 = vadd.f32 %v2488_v2, %v4356_v50  ;;  %v3126_v35 = vld [vmem:[%s3352_s20 + $0x60] sm:$0xff] }
 0x3d9   : > { %v2644_v46 = vadd.f32 %v4417_v47, %v2605_v49  ;;  %v2606_v20 = vadd.f32 %v2574_v25, %v4382_v0  ;;  %v3127_v25 = vld [vmem:[%s3352_s20 + $0x68] sm:$0xff] }
 0x3da   : > { %v4520_v63 = vpop.f32.mrb[52].mxu1 }
 0x3db   : > { %v2676_v42 = vadd.f32 %v3122_v15, %v2644_v46  ;;  %v2645_v37 = vadd.f32 %v4417_v47, %v2606_v20  ;;  %v4524_v44 = vpop.f32.mrb[53].mxu1  ;;  %2517 = vrot.lane.b32.xlu0 %v4520_v63, %s3226_s8 }
 0x3dc   : > { %v4528_v27 = vpop.f32.mrb[54].mxu1  ;;  %v2490_v50 = vpop.permute.xlu0 %2489 }
 0x3dd   : > { %2708 = vst.msk [vmem:[%s4432_s22 + $0x40] sm:$0xff] %vm843_vm2, %v2676_v42  ;;  %v2677_v0 = vadd.f32 %v3123_v11, %v2645_v37  ;;  %v2575_v61 = vadd.f32 %v2490_v50, %v4362_v10  ;;  %v4534_v14 = vpop.f32.mrb[55].mxu1  ;;  %2519 = vrot.lane.b32.xlu1 %v4528_v27, %s3226_s8 }
 0x3de   : > { %v2492_v36 = vpop.permute.xlu1 %2491 }
 0x3df   : > { %2709 = vst.msk [vmem:[%s4432_s22 + $0x48] sm:$0xff] %vm843_vm2, %v2677_v0  ;;  %v2607_v60 = vadd.f32 %v2575_v61, %v4388_v45  ;;  %v2576_v38 = vadd.f32 %v2492_v36, %v4368_v58  ;;  %v3128_v0 = vld [vmem:[%s3352_s20 + $0x70] sm:$0xff] }
 0x3e1   : > { %v2646_v21 = vadd.f32 %v4417_v47, %v2607_v60  ;;  %v2608_v31 = vadd.f32 %v2576_v38, %v4394_v13 }
 0x3e2   : > { %v4544_v10 = vpop.f32.mrb[56].mxu1 }
 0x3e3   : > { %v2678_v7 = vadd.f32 %v3124_v57, %v2646_v21  ;;  %v2647_v43 = vadd.f32 %v4417_v47, %v2608_v31  ;;  %v4548_v33 = vpop.f32.mrb[57].mxu1  ;;  %2521 = vrot.lane.b32.xlu0 %v4544_v10, %s3226_s8 }
 0x3e4   : > { %v4552_v45 = vpop.f32.mrb[58].mxu1  ;;  %v2494_v58 = vpop.permute.xlu0 %2493 }
 0x3e5   : > { %2710 = vst.msk [vmem:[%s4432_s22 + $0x50] sm:$0xff] %vm843_vm2, %v2678_v7  ;;  %v2679_v13 = vadd.f32 %v3125_v40, %v2647_v43  ;;  %v2577_v1 = vadd.f32 %v2494_v58, %v4374_v26  ;;  %v4558_v6 = vpop.f32.mrb[59].mxu1  ;;  %2523 = vrot.lane.b32.xlu1 %v4552_v45, %s3226_s8 }
 0x3e6   : > { %v2496_v8 = vpop.permute.xlu1 %2495 }
 0x3e7   : > { %2711 = vst.msk [vmem:[%s4432_s22 + $0x58] sm:$0xff] %vm843_vm2, %v2679_v13  ;;  %v2609_v3 = vadd.f32 %v2577_v1, %v4400_v52  ;;  %v2578_v29 = vadd.f32 %v2496_v8, %v4380_v16  ;;  %v3130_v13 = vld [vmem:[%s3352_s20 + $0x80] sm:$0xff] }
 0x3e9   : > { %v2648_v53 = vadd.f32 %v4417_v47, %v2609_v3  ;;  %v2610_v55 = vadd.f32 %v2578_v29, %v4406_v39 }
 0x3ea   : > { %v4568_v26 = vpop.f32.mrb[60].mxu1 }
 0x3eb   : > { %v2680_v59 = vadd.f32 %v3126_v35, %v2648_v53  ;;  %v2649_v2 = vadd.f32 %v4417_v47, %v2610_v55  ;;  %v4572_v49 = vpop.f32.mrb[61].mxu1  ;;  %2525 = vrot.lane.b32.xlu0 %v4568_v26, %s3226_s8 }
 0x3ec   : > { %v4576_v52 = vpop.f32.mrb[62].mxu1  ;;  %v2498_v16 = vpop.permute.xlu0 %2497 }
 0x3ed   : > { %2712 = vst.msk [vmem:[%s4432_s22 + $0x60] sm:$0xff] %vm843_vm2, %v2680_v59  ;;  %v2681_v39 = vadd.f32 %v3127_v25, %v2649_v2  ;;  %v2579_v46 = vadd.f32 %v2498_v16, %v4386_v23  ;;  %v4582_v20 = vpop.f32.mrb[63].mxu1  ;;  %2527 = vrot.lane.b32.xlu1 %v4576_v52, %s3226_s8  ;;  %v3132_v59 = vld [vmem:[%s3352_s20 + $0x90] sm:$0xff] }
 0x3ee   : > { %v2500_v15 = vpop.permute.xlu1 %2499 }
 0x3ef   : > { %2713 = vst.msk [vmem:[%s4432_s22 + $0x68] sm:$0xff] %vm843_vm2, %v2681_v39  ;;  %v2611_v42 = vadd.f32 %v2579_v46, %v4426_v48  ;;  %v2580_v37 = vadd.f32 %v2500_v15, %v4392_v34  ;;  %v3129_v48 = vld [vmem:[%s3352_s20 + $0x78] sm:$0xff] }
 0x3f1   : > { %v2650_v50 = vadd.f32 %v4417_v47, %v2611_v42  ;;  %v2612_v11 = vadd.f32 %v2580_v37, %v4438_v19  ;;  %v3134_v37 = vld [vmem:[%s3352_s20 + $0xa0] sm:$0xff] }
 0x3f2   : > { %v2420_v23 = vpop.f32.mrb[64].mxu1 }
 0x3f3   : > { %v2682_v61 = vadd.f32 %v3128_v0, %v2650_v50  ;;  %v2651_v36 = vadd.f32 %v4417_v47, %v2612_v11  ;;  %2529 = vrot.lane.b32.xlu0 %v2420_v23, %s3226_s8  ;;  %v4595_v60 = vpop.f32.mrb[65].mxu1 }
 0x3f4   : > { %v2424_v38 = vpop.f32.mrb[66].mxu1 }
 0x3f5   : > { %2714 = vst.msk [vmem:[%s4432_s22 + $0x70] sm:$0xff] %vm843_vm2, %v2682_v61  ;;  %v2683_v34 = vadd.f32 %v3129_v48, %v2651_v36  ;;  %v4600_v21 = vpop.f32.mrb[67].mxu1  ;;  %2531 = vrot.lane.b32.xlu1 %v2424_v38, %s3226_s8  ;;  %v3136_v48 = vld [vmem:[%s3352_s20 + $0xb0] sm:$0xff]  ;;  %s2982_s8 = sshll.u32 %s3216_s27, 12  ;;  %s4710_s27 = scalar_lea.sflag [#allocation3], %s392_s16 }
 0x3f6   : > { %s4699_s10 = scalar_lea.hbm %s4763_s7, %s2982_s8 }
 0x3f7   : > { %2715 = vst.msk [vmem:[%s4432_s22 + $0x78] sm:$0xff] %vm843_vm2, %v2683_v34 }
 0x42d   : > { %v2502_v19 = vpop.permute.xlu0 %2501 }
 0x42e   : > { %v2581_v31 = vadd.f32 %v2502_v19, %v4398_v22  ;;  %v3131_v22 = vld [vmem:[%s3352_s20 + $0x88] sm:$0xff] }
 0x42f   : > { %v2504_v57 = vpop.permute.xlu1 %2503 }
 0x430   : > { %v2613_v7 = vadd.f32 %v2581_v31, %v4452_v17  ;;  %v2582_v43 = vadd.f32 %v2504_v57, %v4404_v62 }
 0x432   : > { %v2652_v58 = vadd.f32 %v4417_v47, %v2613_v7  ;;  %v2614_v40 = vadd.f32 %v2582_v43, %v4462_v54 }
 0x434   : > { %v2684_v1 = vadd.f32 %v3130_v13, %v2652_v58  ;;  %v2653_v8 = vadd.f32 %v4417_v47, %v2614_v40  ;;  %v3138_v40 = vld [vmem:[%s3352_s20 + $0xc0] sm:$0xff] }
 0x435   : > { %v2506_v3 = vpop.permute.xlu0 %2505 }
 0x436   : > { %2716 = vst.msk [vmem:[%s4432_s22 + $0x80] sm:$0xff] %vm843_vm2, %v2684_v1  ;;  %v2685_v29 = vadd.f32 %v3131_v22, %v2653_v8  ;;  %v2583_v17 = vadd.f32 %v2506_v3, %v4422_v32  ;;  %v3133_v32 = vld [vmem:[%s3352_s20 + $0x98] sm:$0xff] }
 0x437   : > { %v2508_v62 = vpop.permute.xlu1 %2507 }
 0x438   : > { %2717 = vst.msk [vmem:[%s4432_s22 + $0x88] sm:$0xff] %vm843_vm2, %v2685_v29  ;;  %v2615_v53 = vadd.f32 %v2583_v17, %v4476_v51  ;;  %v2584_v54 = vadd.f32 %v2508_v62, %v4430_v30  ;;  %v3140_v62 = vld [vmem:[%s3352_s20 + $0xd0] sm:$0xff] }
 0x43a   : > { %v2654_v55 = vadd.f32 %v4417_v47, %v2615_v53  ;;  %v2616_v35 = vadd.f32 %v2584_v54, %v4486_v9 }
 0x43c   : > { %v2686_v2 = vadd.f32 %v3132_v59, %v2654_v55  ;;  %v2655_v16 = vadd.f32 %v4417_v47, %v2616_v35 }
 0x43d   : > { %v2510_v25 = vpop.permute.xlu0 %2509 }
 0x43e   : > { %2718 = vst.msk [vmem:[%s4432_s22 + $0x90] sm:$0xff] %vm843_vm2, %v2686_v2  ;;  %v2687_v39 = vadd.f32 %v3133_v32, %v2655_v16  ;;  %v2585_v51 = vadd.f32 %v2510_v25, %v4448_v12  ;;  %v3135_v12 = vld [vmem:[%s3352_s20 + $0xa8] sm:$0xff]  ;;  %v3142_v32 = vld [vmem:[%s3352_s20 + $0xe0] sm:$0xff] }
 0x43f   : > { %v2512_v30 = vpop.permute.xlu1 %2511 }
 0x440   : > { %2719 = vst.msk [vmem:[%s4432_s22 + $0x98] sm:$0xff] %vm843_vm2, %v2687_v39  ;;  %v2617_v46 = vadd.f32 %v2585_v51, %v4500_v5  ;;  %v2586_v9 = vadd.f32 %v2512_v30, %v4456_v41 }
 0x442   : > { %v2656_v15 = vadd.f32 %v4417_v47, %v2617_v46  ;;  %v2618_v42 = vadd.f32 %v2586_v9, %v4510_v28 }
 0x444   : > { %v2688_v50 = vadd.f32 %v3134_v37, %v2656_v15  ;;  %v2657_v11 = vadd.f32 %v4417_v47, %v2618_v42 }
 0x445   : > { %v2514_v23 = vpop.permute.xlu0 %2513 }
 0x446   : > { %2720 = vst.msk [vmem:[%s4432_s22 + $0xa0] sm:$0xff] %vm843_vm2, %v2688_v50  ;;  %v2689_v0 = vadd.f32 %v3135_v12, %v2657_v11  ;;  %v2587_v5 = vadd.f32 %v2514_v23, %v4472_v56  ;;  %v3137_v56 = vld [vmem:[%s3352_s20 + $0xb8] sm:$0xff]  ;;  %v3144_v23 = vld [vmem:[%s3352_s20 + $0xf0] sm:$0xff] }
 0x447   : > { %v2516_v41 = vpop.permute.xlu1 %2515 }
 0x448   : > { %2721 = vst.msk [vmem:[%s4432_s22 + $0xa8] sm:$0xff] %vm843_vm2, %v2689_v0  ;;  %v2619_v61 = vadd.f32 %v2587_v5, %v4524_v44  ;;  %v2588_v28 = vadd.f32 %v2516_v41, %v4480_v24 }
 0x44a   : > { %v2658_v36 = vadd.f32 %v4417_v47, %v2619_v61  ;;  %v2620_v38 = vadd.f32 %v2588_v28, %v4534_v14 }
 0x44c   : > { %v2690_v34 = vadd.f32 %v3136_v48, %v2658_v36  ;;  %v2659_v19 = vadd.f32 %v4417_v47, %v2620_v38 }
 0x44d   : > { %v2518_v31 = vpop.permute.xlu0 %2517 }
 0x44e   : > { %2722 = vst.msk [vmem:[%s4432_s22 + $0xb0] sm:$0xff] %vm843_vm2, %v2690_v34  ;;  %v2691_v57 = vadd.f32 %v3137_v56, %v2659_v19  ;;  %v2589_v44 = vadd.f32 %v2518_v31, %v4496_v4  ;;  %v3139_v4 = vld [vmem:[%s3352_s20 + $0xc8] sm:$0xff] }
 0x44f   : > { %v2520_v24 = vpop.permute.xlu1 %2519 }
 0x450   : > { %2723 = vst.msk [vmem:[%s4432_s22 + $0xb8] sm:$0xff] %vm843_vm2, %v2691_v57  ;;  %v2621_v7 = vadd.f32 %v2589_v44, %v4548_v33  ;;  %v2590_v14 = vadd.f32 %v2520_v24, %v4504_v18 }
 0x452   : > { %v2660_v43 = vadd.f32 %v4417_v47, %v2621_v7  ;;  %v2622_v58 = vadd.f32 %v2590_v14, %v4558_v6 }
 0x454   : > { %v2692_v13 = vadd.f32 %v3138_v40, %v2660_v43  ;;  %v2661_v1 = vadd.f32 %v4417_v47, %v2622_v58 }
 0x455   : > { %v2522_v8 = vpop.permute.xlu0 %2521 }
 0x456   : > { %2724 = vst.msk [vmem:[%s4432_s22 + $0xc0] sm:$0xff] %vm843_vm2, %v2692_v13  ;;  %v2693_v3 = vadd.f32 %v3139_v4, %v2661_v1  ;;  %v2591_v33 = vadd.f32 %v2522_v8, %v4520_v63  ;;  %v3141_v63 = vld [vmem:[%s3352_s20 + $0xd8] sm:$0xff] }
 0x457   : > { %v2524_v18 = vpop.permute.xlu1 %2523 }
 0x458   : > { %2725 = vst.msk [vmem:[%s4432_s22 + $0xc8] sm:$0xff] %vm843_vm2, %v2693_v3  ;;  %v2623_v22 = vadd.f32 %v2591_v33, %v4572_v49  ;;  %v2592_v6 = vadd.f32 %v2524_v18, %v4528_v27 }
 0x45a   : > { %v2662_v29 = vadd.f32 %v4417_v47, %v2623_v22  ;;  %v2624_v17 = vadd.f32 %v2592_v6, %v4582_v20 }
 0x45c   : > { %v2694_v53 = vadd.f32 %v3140_v62, %v2662_v29  ;;  %v2663_v54 = vadd.f32 %v4417_v47, %v2624_v17 }
 0x45d   : > { %v2526_v55 = vpop.permute.xlu0 %2525 }
 0x45e   : > { %2726 = vst.msk [vmem:[%s4432_s22 + $0xd0] sm:$0xff] %vm843_vm2, %v2694_v53  ;;  %v2695_v35 = vadd.f32 %v3141_v63, %v2663_v54  ;;  %v2593_v49 = vadd.f32 %v2526_v55, %v4544_v10 }
 0x45f   : > { %v2528_v59 = vpop.permute.xlu1 %2527 }
 0x460   : > { %2727 = vst.msk [vmem:[%s4432_s22 + $0xd8] sm:$0xff] %vm843_vm2, %v2695_v35  ;;  %v2625_v27 = vadd.f32 %v2593_v49, %v4595_v60  ;;  %v2594_v20 = vadd.f32 %v2528_v59, %v4552_v45  ;;  %v3143_v60 = vld [vmem:[%s3352_s20 + $0xe8] sm:$0xff] }
 0x462   : > { %v2664_v2 = vadd.f32 %v4417_v47, %v2625_v27  ;;  %v2626_v16 = vadd.f32 %v2594_v20, %v4600_v21 }
 0x463   : > { %v2430_v25 = vpop.f32.mrb[68].mxu1 }
 0x464   : > { %v2696_v39 = vadd.f32 %v3142_v32, %v2664_v2  ;;  %v2665_v51 = vadd.f32 %v4417_v47, %v2626_v16  ;;  %v2431_v10 = vpop.f32.mrb[69].mxu1 }
 0x465   : > { %v2530_v30 = vpop.permute.xlu0 %2529  ;;  %v2433_v46 = vpop.f32.mrb[70].mxu1 }
 0x466   : > { %2728 = vst.msk [vmem:[%s4432_s22 + $0xe0] sm:$0xff] %vm843_vm2, %v2696_v39  ;;  %v2697_v45 = vadd.f32 %v3143_v60, %v2665_v51  ;;  %v2595_v9 = vadd.f32 %v2530_v30, %v4568_v26  ;;  %v2434_v21 = vpop.f32.mrb[71].mxu1 }
 0x467   : > { %v2532_v15 = vpop.permute.xlu1 %2531 }
 0x468   : > { %2729 = vst.msk [vmem:[%s4432_s22 + $0xe8] sm:$0xff] %vm843_vm2, %v2697_v45  ;;  %v2627_v42 = vadd.f32 %v2595_v9, %v2431_v10  ;;  %v2596_v37 = vadd.f32 %v2532_v15, %v4576_v52  ;;  %v3145_v52 = vld [vmem:[%s3352_s20 + $0xf8] sm:$0xff] }
 0x46a   : > { %v2666_v50 = vadd.f32 %v4417_v47, %v2627_v42  ;;  %v2628_v11 = vadd.f32 %v2596_v37, %v2434_v21 }
 0x46c   : > { %v2698_v12 = vadd.f32 %v3144_v23, %v2666_v50  ;;  %v2667_v26 = vadd.f32 %v4417_v47, %v2628_v11 }
 0x46e   : > { %2730 = vst.msk [vmem:[%s4432_s22 + $0xf0] sm:$0xff] %vm843_vm2, %v2698_v12  ;;  %v2699_v0 = vadd.f32 %v3145_v52, %v2667_v26 }
 0x470   : > { %2731 = vst.msk [vmem:[%s4432_s22 + $0xf8] sm:$0xff] %vm843_vm2, %v2699_v0 }
 0x471   : > { %3159 = shalt.err (!%p3156_p5)
}
 0x472   : > { %s3160_s20 = scalar_lea.hbm %s4699_s10, 4096  ;;  %s3164_s22 = scalar_lea.hbm %s4763_s7, 8192 }
 0x473   : > { %p3161_p6 = scmp.ne.s32.totalorder %s4699_s10, %s3160_s20  ;;  %p3165_p10 = scmp.lt.u32.totalorder %s4699_s10, %s4763_s7 }
 0x474   : > { %p3166_p11 = scmp.lt.u32.totalorder %s3164_s22, %s3160_s20  ;;  %p3168_p13 = scmp.lt.u32.totalorder %s3160_s20, %s4699_s10 }
 0x475   : > { %p3162_p7 = pnand %p3161_p6, %p3310_p4 }
 0x476   : > { %p3167_p12 = por %p3166_p11, %p3165_p10 }
 0x477   : > { %p3163_p9 = pneg %p3162_p7 }
 0x478   : > { %p3169_p0 = por %p3168_p13, %p3167_p12 }
 0x47a   : > { %p3170_p1 = pnand %p3169_p0, %p3163_p9 }
 0x47c   : > { %3173 = shalt.err (!%p3170_p1)
}
 0x47d   : > { %s3228_s23 = smov 128   ;;  %s3229_s12 = smov 8  }
 0x47e   : > { %2984 = dma.vmem_to_hbm [thread:$0]  (%p3310_p4), %s4701_s30, 4096, %s4699_s10, %s4710_s27, %s3228_s23, %s3228_s23, %s3229_s12  }
 0x47f PF: > { %p2990_p2 = scmp.ge.s32.totalorder %s3224_s29, 2  ;;  %s2764_s15 = sand.u32 1, %s3204_s24  }
 0x480   : > { %s2765_s17 = scalar_lea.sflag [#allocation3], %s2764_s15 }
 0x481   : > { %p2987_p3 = pnand %p2990_p2, %p3317_p8 }
 0x483   : > { %3199 = dma.done.wait (!%p2987_p3), %s2765_s17, 4096  }
 0x484   : > { %3201 = vsyncadd (!%p2987_p3), %s2765_s17, 4294963200  ;;  %s20_s29 = sadd.s32 1, %s3224_s29   ;;  %s4804_s24 = smov %s3208_s25 }
 0x485   : > { %p17_p5 = scmp.ge.s32.totalorder %s20_s29, 4   ;;  %s4805_s25 = smov %s3212_s26 }
 0x486   : > { %s4806_s26 = smov %s3323_s14  ;;  %s4807_s27 = smov %s3220_s28 }
 0x487   : > { %s4808_s28 = smov %s4810_s9  ;;  %19 = sbr.rel (!%p17_p5) target bundleno = 4 (0x4), region = 89 }
 0x48e   :  { %2770 = vsyncpa [#allocation3], 1 }
 0x48f   :  { %2772 = vsyncpa [#allocation3 + $0x1], 1 }

</bundles_post_ra>
